<compile_context>
chip_gen: v7x
topology: tpu7x:2x2x1
jax: 0.10.0
libtpu: 0.0.40
codegen_flags: <defaults>
</compile_context>

<pallas_src>
import jax
import jax.numpy as jnp
import numpy as np
from jax.experimental import pallas as pl
from jax.experimental.pallas import tpu as pltpu


def _round_up(x, m):
    return (x + m - 1) // m * m


# ---------------------------------------------------------------------------
# Phase 1: per-edge messages  msg = (distance_proj(edge_attr)) * C(r) * xn
# ---------------------------------------------------------------------------
def _make_msg_kernel(cutoff):
    pi_over_cut = float(np.pi / cutoff)
    cutoff = float(cutoff)

    def kernel(ea_ref,    # [E_t, R]      bf16  edge_attr (unpadded R)
               ew_ref,    # [E_t, 1]      f32   edge_weight
               xn_ref,    # [E_t, H_pad]  bf16  embedding(z)[edge_index[1]]
               wd_ref,    # [R, H_pad]    bf16  distance_proj weight
               bd_ref,    # [1, H_pad]    f32   distance_proj bias
               msg_ref):  # [E_t, H_pad]  bf16
        # cosine cutoff in f32 (strict '<' matches the reference)
        ew = ew_ref[...]
        c = 0.5 * (jnp.cos(ew * pi_over_cut) + 1.0)
        c = jnp.where(ew < cutoff, c, jnp.zeros_like(c))
        # W = distance_proj(edge_attr); K = R (no HBM padding of R)
        w = jnp.dot(ea_ref[...], wd_ref[...],
                    preferred_element_type=jnp.float32) + bd_ref[...]
        msg = (w * c) * xn_ref[...].astype(jnp.float32)
        msg_ref[...] = msg.astype(msg_ref.dtype)

    return kernel


# ---------------------------------------------------------------------------
# Phase 2: scatter-add (one-hot matmul on MXU) + combine on the last edge tile
# ---------------------------------------------------------------------------
def _make_scatter_combine_kernel(node_tile, edge_tile):
    def kernel(lo_ref,    # SMEM [n_node_tiles] i32  first edge tile for this node tile
               hi_ref,    # SMEM [n_node_tiles] i32  last edge tile (inclusive; -1 if none)
               src_ref,   # [1, E_t]        i32   edge_index[0] (sorted)
               msg_ref,   # [E_t, H_pad]    bf16
               nf_ref,    # [N_t, H_pad]    bf16  node_feat
               wct_ref,   # [H_pad, H_pad]  bf16  combine weight, node_feat half
               wcb_ref,   # [H_pad, H_pad]  f32   combine weight, scattered half
               bc_ref,    # [1, H_pad]      f32   combine bias
               out_ref,   # [N_t, H_pad]    f32
               acc_ref):  # [N_t, H_pad]    f32   scratch accumulator
        ni = pl.program_id(0)
        ei = pl.program_id(1)

        @pl.when(ei == 0)
        def _init():
            acc_ref[...] = jnp.zeros_like(acc_ref)

        lo = lo_ref[ni]
        hi = hi_ref[ni]

        # only edge tiles whose (sorted) src range overlaps this node tile
        @pl.when(jnp.logical_and(ei >= lo, ei <= hi))
        def _scatter():
            rows = (jax.lax.broadcasted_iota(jnp.int32, (node_tile, edge_tile), 0)
                    + ni * node_tile)
            s = jnp.where(rows == src_ref[...], 1.0, 0.0).astype(jnp.bfloat16)
            acc_ref[...] += jnp.dot(s, msg_ref[...],
                                    preferred_element_type=jnp.float32)

        # finalize: combine(cat([node_feat, scattered])) as two K=H_pad matmuls;
        # the scattered half stays in f32 (no precision-losing bf16 round trip).
        @pl.when(ei == pl.num_programs(1) - 1)
        def _finalize():
            out = (jnp.dot(nf_ref[...], wct_ref[...],
                           preferred_element_type=jnp.float32)
                   + jnp.dot(acc_ref[...], wcb_ref[...],
                             preferred_element_type=jnp.float32)
                   + bc_ref[...])
            out_ref[...] = out.astype(out_ref.dtype)

    return kernel


def neighbor_embedding_pallas(z, node_feat, edge_index, edge_weight, edge_attr,
                              emb_table, wd, bd, wc, bc, cutoff,
                              *, node_tile=256, edge_tile=256):
    """Pallas implementation of NeighborEmbedding.forward.

    z:           [N]   int atom types
    node_feat:   [N, H]
    edge_index:  [2, E] int (row 0: scatter-add target, row 1: neighbor gather)
    edge_weight: [E]
    edge_attr:   [E, R]
    emb_table:   [T, H]        (nn.Embedding weight)
    wd, bd:      [R, H], [H]   (distance_proj, x @ W layout)
    wc, bc:      [2H, H], [H]  (combine,       x @ W layout)
    """
    N, H = node_feat.shape
    E, R = edge_attr.shape
    f32, bf16, i32 = jnp.float32, jnp.bfloat16, jnp.int32

    h_pad = _round_up(H, 128)
    n_pad = _round_up(N, node_tile)
    e_pad = _round_up(E, edge_tile)
    n_node_tiles = n_pad // node_tile
    n_edge_tiles = e_pad // edge_tile

    # ---- cheap plain-JAX glue: sort edges by scatter target, gather, pad ----
    perm = jnp.argsort(edge_index[0])
    src = edge_index[0][perm].astype(i32)
    dst = edge_index[1][perm].astype(i32)
    ew = edge_weight[perm].astype(f32)
    ea = edge_attr[perm]
    xn = emb_table.astype(f32)[z[dst]]                       # hoisted gather [E, H]

    ea_p = jnp.zeros((e_pad, R), bf16).at[:E, :].set(ea.astype(bf16))
    # Padded edges get r = 2*cutoff so the strict '<' cutoff mask zeroes their msg.
    ew_p = jnp.full((e_pad, 1), 2.0 * float(cutoff), f32).at[:E, 0].set(ew)
    xn_p = jnp.zeros((e_pad, h_pad), bf16).at[:E, :H].set(xn.astype(bf16))
    # Padded edges scatter into the last (padded) node row; their msg is 0 anyway.
    src_p = jnp.full((1, e_pad), n_pad - 1, i32).at[0, :E].set(src)
    nf_p = jnp.zeros((n_pad, h_pad), bf16).at[:N, :H].set(node_feat.astype(bf16))

    wd_p = jnp.zeros((R, h_pad), bf16).at[:, :H].set(wd.astype(bf16))
    bd_p = jnp.zeros((1, h_pad), f32).at[0, :H].set(bd.astype(f32))
    wct_p = jnp.zeros((h_pad, h_pad), bf16).at[:H, :H].set(wc[:H].astype(bf16))
    wcb_p = jnp.zeros((h_pad, h_pad), f32).at[:H, :H].set(wc[H:].astype(f32))
    bc_p = jnp.zeros((1, h_pad), f32).at[0, :H].set(bc.astype(f32))

    # per-node-tile inclusive range of edge tiles (sorted src => contiguous range)
    src_sorted = src_p[0]
    node_lo = node_tile * jnp.arange(n_node_tiles, dtype=i32)
    starts = jnp.searchsorted(src_sorted, node_lo, side='left')
    ends = jnp.searchsorted(src_sorted, node_lo + node_tile, side='left')
    nonempty = ends > starts
    lo_tile = jnp.where(nonempty, starts // edge_tile, 0).astype(i32)
    hi_tile = jnp.where(nonempty, (ends - 1) // edge_tile, -1).astype(i32)

    # ---------------- phase 1: per-edge messages ----------------
    msg = pl.pallas_call(
        _make_msg_kernel(float(cutoff)),
        out_shape=jax.ShapeDtypeStruct((e_pad, h_pad), bf16),
        grid_spec=pltpu.PrefetchScalarGridSpec(
            num_scalar_prefetch=0,
            grid=(n_edge_tiles,),
            in_specs=[
                pl.BlockSpec((edge_tile, R), lambda e: (e, 0)),      # edge_attr
                pl.BlockSpec((edge_tile, 1), lambda e: (e, 0)),      # edge_weight
                pl.BlockSpec((edge_tile, h_pad), lambda e: (e, 0)),  # gathered emb
                pl.BlockSpec((R, h_pad), lambda e: (0, 0)),          # distance_proj W
                pl.BlockSpec((1, h_pad), lambda e: (0, 0)),          # distance_proj b
            ],
            out_specs=pl.BlockSpec((edge_tile, h_pad), lambda e: (e, 0)),
        ),
        compiler_params=pltpu.CompilerParams(
            dimension_semantics=("parallel",),
            vmem_limit_bytes=32 * 1024 * 1024),
        cost_estimate=pl.CostEstimate(
            flops=2 * e_pad * R * h_pad + 6 * e_pad * h_pad,
            transcendentals=e_pad,
            bytes_accessed=(2 * (ea_p.size + xn_p.size + wd_p.size)
                            + 4 * (ew_p.size + bd_p.size)
                            + 2 * e_pad * h_pad)),
    )(ea_p, ew_p, xn_p, wd_p, bd_p)

    # ---------------- phase 2: scatter-add + combine ----------------
    def _edge_block(ei, lo, hi):
        # clamp ei into [lo, max(hi, lo)]: out-of-range steps reuse the resident
        # block (no DMA); empty node tiles (hi = -1) pin to block 0.
        return jnp.minimum(jnp.maximum(ei, lo), jnp.maximum(hi, lo))

    src_map = lambda ni, ei, lo, hi: (0, _edge_block(ei, lo[ni], hi[ni]))
    msg_map = lambda ni, ei, lo, hi: (_edge_block(ei, lo[ni], hi[ni]), 0)
    node_map = lambda ni, ei, lo, hi: (ni, 0)
    const_map = lambda ni, ei, lo, hi: (0, 0)

    out = pl.pallas_call(
        _make_scatter_combine_kernel(node_tile, edge_tile),
        out_shape=jax.ShapeDtypeStruct((n_pad, h_pad), node_feat.dtype),
        grid_spec=pltpu.PrefetchScalarGridSpec(
            num_scalar_prefetch=2,
            grid=(n_node_tiles, n_edge_tiles),
            in_specs=[
                pl.BlockSpec((1, edge_tile), src_map),        # src (scatter idx)
                pl.BlockSpec((edge_tile, h_pad), msg_map),    # msg
                pl.BlockSpec((node_tile, h_pad), node_map),   # node_feat
                pl.BlockSpec((h_pad, h_pad), const_map),      # combine W (node half)
                pl.BlockSpec((h_pad, h_pad), const_map),      # combine W (scatter half)
                pl.BlockSpec((1, h_pad), const_map),          # combine b
            ],
            out_specs=pl.BlockSpec((node_tile, h_pad), node_map),
            scratch_shapes=[pltpu.VMEM((node_tile, h_pad), jnp.float32)],
        ),
        compiler_params=pltpu.CompilerParams(
            dimension_semantics=("parallel", "arbitrary"),
            vmem_limit_bytes=32 * 1024 * 1024),
        cost_estimate=pl.CostEstimate(
            flops=(2 * e_pad * node_tile * h_pad        # ~one pass over edges (ranges skip the rest)
                   + 4 * n_pad * h_pad * h_pad),        # split combine
            transcendentals=0,
            bytes_accessed=(2 * (e_pad * h_pad + int(nf_p.size) + int(wct_p.size))
                            + 4 * (e_pad + int(wcb_p.size) + int(bc_p.size)
                                   + n_pad * h_pad))),
    )(lo_tile, hi_tile, src_p, msg, nf_p, wct_p, wcb_p, bc_p)

    return out[:N, :H]


def neighbor_embedding_ref(z, node_feat, edge_index, edge_weight, edge_attr,
                           emb_table, wd, bd, wc, bc, cutoff):
    """Pure-JAX f32 reference mirroring the PyTorch forward."""
    N, H = node_feat.shape
    c = 0.5 * (jnp.cos(edge_weight * jnp.pi / cutoff) + 1.0)
    c = jnp.where(edge_weight < cutoff, c, 0.0)
    w = (edge_attr @ wd + bd) * c[:, None]
    xn = emb_table[z]
    msg = w * xn[edge_index[1]]
    scattered = jnp.zeros((N, H), node_feat.dtype).at[edge_index[0]].add(msg)
    return jnp.concatenate([node_feat, scattered], axis=1) @ wc + bc


if __name__ == "__main__":
    # small shapes, small tiles: exercises 3 node tiles x 4 edge tiles and the
    # per-node-tile edge-range skipping.
    num_nodes = 150
    num_edges = 400
    hidden = 32
    num_rbf = 16
    ntypes = 5
    cutoff = 5.0

    key = jax.random.PRNGKey(0)
    ks = jax.random.split(key, 8)

    z = jax.random.randint(ks[0], (num_nodes,), 0, ntypes, dtype=jnp.int32)
    node_feat = jax.random.normal(ks[1], (num_nodes, hidden), dtype=jnp.float32)
    edge_index = jax.random.randint(ks[2], (2, num_edges), 0, num_nodes,
                                    dtype=jnp.int32)
    edge_weight = jax.random.uniform(ks[3], (num_edges,), dtype=jnp.float32,
                                     minval=0.5, maxval=7.0)  # some past cutoff
    edge_attr = jax.random.normal(ks[4], (num_edges, num_rbf), dtype=jnp.float32)

    # deterministic parameter init (synthetic; matches module shapes)
    emb_table = jax.random.normal(ks[5], (ntypes, hidden), dtype=jnp.float32)
    lim_d = float(np.sqrt(6.0 / (num_rbf + hidden)))          # xavier_uniform
    wd = jax.random.uniform(ks[6], (num_rbf, hidden), dtype=jnp.float32,
                            minval=-lim_d, maxval=lim_d)
    bd = jnp.zeros((hidden,), jnp.float32)
    lim_c = float(np.sqrt(6.0 / (2 * hidden + hidden)))
    wc = jax.random.uniform(ks[7], (2 * hidden, hidden), dtype=jnp.float32,
                            minval=-lim_c, maxval=lim_c)
    bc = jnp.zeros((hidden,), jnp.float32)

    out = neighbor_embedding_pallas(z, node_feat, edge_index, edge_weight,
                                    edge_attr, emb_table, wd, bd, wc, bc, cutoff,
                                    node_tile=64, edge_tile=128)
    out = jax.block_until_ready(out)

    ref = neighbor_embedding_ref(z, node_feat, edge_index, edge_weight,
                                 edge_attr, emb_table, wd, bd, wc, bc, cutoff)
    # bf16 MXU operands with f32 accumulation -> relaxed tolerance vs f32 reference
    np.testing.assert_allclose(np.asarray(out), np.asarray(ref),
                               rtol=2e-2, atol=1e-1)
    print("KERNEL_OK")
</pallas_src>

<mosaic_0001>
module attributes {stable_mosaic.version = 11 : i64} {
  func.func @kernel(%arg0: i32, %arg1: memref<128x16xbf16, #tpu.memory_space<vmem>>, %arg2: memref<128x1xf32, #tpu.memory_space<vmem>>, %arg3: memref<128x128xbf16, #tpu.memory_space<vmem>>, %arg4: memref<16x128xbf16, #tpu.memory_space<vmem>>, %arg5: memref<1x128xf32, #tpu.memory_space<vmem>>, %arg6: memref<128x128xbf16, #tpu.memory_space<vmem>>) attributes {dimension_semantics = [#tpu.dimension_semantics<parallel>], iteration_bounds = array<i64: 4>, scalar_prefetch = 0 : i64, scratch_operands = 0 : i64, tpu.core_type = #tpu.core_type<tc>, window_params = [{transform_indices = @transform_0, window_bounds = array<i64: 128, 16>}, {transform_indices = @transform_1, window_bounds = array<i64: 128, 1>}, {transform_indices = @transform_2, window_bounds = array<i64: 128, 128>}, {pipeline_mode = #tpu.pipeline_mode<synchronous>, transform_indices = @transform_3, window_bounds = array<i64: 16, 128>}, {pipeline_mode = #tpu.pipeline_mode<synchronous>, transform_indices = @transform_4, window_bounds = array<i64: 1, 128>}, {transform_indices = @transform_5, window_bounds = array<i64: 128, 128>}]} {
    %c0 = arith.constant 0 : index
    %c0_0 = arith.constant 0 : index
    %0 = vector.load %arg2[%c0, %c0_0] : memref<128x1xf32, #tpu.memory_space<vmem>>, vector<128x1xf32>
    %cst = arith.constant 0.628318548 : f32
    %1 = vector.broadcast %cst : f32 to vector<128x1xf32>
    %2 = arith.mulf %0, %1 : vector<128x1xf32>
    %3 = math.cos %2 : vector<128x1xf32>
    %cst_1 = arith.constant 1.000000e+00 : f32
    %4 = vector.broadcast %cst_1 : f32 to vector<128x1xf32>
    %5 = arith.addf %3, %4 : vector<128x1xf32>
    %cst_2 = arith.constant 5.000000e-01 : f32
    %6 = vector.broadcast %cst_2 : f32 to vector<128x1xf32>
    %7 = arith.mulf %6, %5 : vector<128x1xf32>
    %cst_3 = arith.constant 5.000000e+00 : f32
    %8 = vector.broadcast %cst_3 : f32 to vector<128x1xf32>
    %9 = arith.cmpf olt, %0, %8 : vector<128x1xf32>
    %cst_4 = arith.constant 0.000000e+00 : f32
    %10 = vector.broadcast %cst_4 : f32 to vector<128x1xf32>
    %11 = arith.select %9, %7, %10 : vector<128x1xi1>, vector<128x1xf32>
    %c0_5 = arith.constant 0 : index
    %c0_6 = arith.constant 0 : index
    %12 = vector.load %arg1[%c0_5, %c0_6] : memref<128x16xbf16, #tpu.memory_space<vmem>>, vector<128x16xbf16>
    %c0_7 = arith.constant 0 : index
    %c0_8 = arith.constant 0 : index
    %13 = vector.load %arg4[%c0_7, %c0_8] : memref<16x128xbf16, #tpu.memory_space<vmem>>, vector<16x128xbf16>
    %cst_9 = arith.constant dense<0.000000e+00> : vector<128x128xf32>
    %14 = tpu.matmul %12, %13, %cst_9 {dimension_numbers = #tpu.dot_dimension_numbers<[1], [0], [0], [1], [0, 0, 1, 1], [], []>} : vector<128x16xbf16>, vector<16x128xbf16>, vector<128x128xf32> -> vector<128x128xf32>
    %c0_10 = arith.constant 0 : index
    %c0_11 = arith.constant 0 : index
    %15 = vector.load %arg5[%c0_10, %c0_11] : memref<1x128xf32, #tpu.memory_space<vmem>>, vector<1x128xf32>
    %16 = vector.broadcast %15 : vector<1x128xf32> to vector<128x128xf32>
    %17 = arith.addf %14, %16 : vector<128x128xf32>
    %18 = vector.broadcast %11 : vector<128x1xf32> to vector<128x128xf32>
    %19 = arith.mulf %17, %18 : vector<128x128xf32>
    %c0_12 = arith.constant 0 : index
    %c0_13 = arith.constant 0 : index
    %20 = vector.load %arg3[%c0_12, %c0_13] : memref<128x128xbf16, #tpu.memory_space<vmem>>, vector<128x128xbf16>
    %21 = arith.extf %20 : vector<128x128xbf16> to vector<128x128xf32>
    %22 = arith.mulf %19, %21 : vector<128x128xf32>
    %23 = arith.truncf %22 : vector<128x128xf32> to vector<128x128xbf16>
    %c0_14 = arith.constant 0 : index
    %c0_15 = arith.constant 0 : index
    %24 = vector.load %arg6[%c0_14, %c0_15] : memref<128x128xbf16, #tpu.memory_space<vmem>>, vector<128x128xbf16>
    tpu.vector_store %arg6[%c0_14, %c0_15], %23 {strides = array<i32>} : memref<128x128xbf16, #tpu.memory_space<vmem>>, vector<128x128xbf16>,
    return
  }
  func.func @transform_0(%arg0: i32) -> (i32, i32) {
    %c0_i32 = arith.constant 0 : i32
    %c0_i32_0 = arith.constant 0 : i32
    return %arg0, %c0_i32 : i32, i32
  }
  func.func @transform_1(%arg0: i32) -> (i32, i32) {
    %c0_i32 = arith.constant 0 : i32
    %c0_i32_0 = arith.constant 0 : i32
    return %arg0, %c0_i32 : i32, i32
  }
  func.func @transform_2(%arg0: i32) -> (i32, i32) {
    %c0_i32 = arith.constant 0 : i32
    %c0_i32_0 = arith.constant 0 : i32
    return %arg0, %c0_i32 : i32, i32
  }
  func.func @transform_3(%arg0: i32) -> (i32, i32) {
    %c0_i32 = arith.constant 0 : i32
    %c0_i32_0 = arith.constant 0 : i32
    %c0_i32_1 = arith.constant 0 : i32
    return %c0_i32, %c0_i32_0 : i32, i32
  }
  func.func @transform_4(%arg0: i32) -> (i32, i32) {
    %c0_i32 = arith.constant 0 : i32
    %c0_i32_0 = arith.constant 0 : i32
    %c0_i32_1 = arith.constant 0 : i32
    return %c0_i32, %c0_i32_0 : i32, i32
  }
  func.func @transform_5(%arg0: i32) -> (i32, i32) {
    %c0_i32 = arith.constant 0 : i32
    %c0_i32_0 = arith.constant 0 : i32
    return %arg0, %c0_i32 : i32, i32
  }
}

</mosaic_0001>

<bundles_post_ra>
// kernel: tpu_custom_call.1
= control target key start
LH: loop header
LB: loop body
LE: loop exit
PB: predicated region body
PF: predicated region fallthrough
CT: control target
= control target key end

     0   :  { %10 = vsyncpa [#allocation3], 0  ;;  %s4693_s0 = inlined_call_operand.vmem [shape: bf16[512,16], index: 0, kind: input, shape index: {}]   ;;  %s4694_s1 = inlined_call_operand.vmem [shape: f32[512,1], index: 1, kind: input, shape index: {}]   ;;  %s4695_s2 = inlined_call_operand.vmem [shape: bf16[512,128], index: 2, kind: input, shape index: {}]   ;;  %s4696_s3 = inlined_call_operand.vmem [shape: bf16[16,128], index: 3, kind: input, shape index: {}]   ;;  %s4697_s4 = inlined_call_operand.vmem [shape: f32[1,128], index: 4, kind: input, shape index: {}]   ;;  %s4698_s5 = inlined_call_operand.hbm [shape: bf16[512,128], index: 5, kind: output, shape index: {}]  }
   0x1   :  { %12 = vsyncpa [#allocation3 + $0x1], 0  ;;  %s3069_s18 = smov 0   ;;  %s3071_s19 = smov 0  }
   0x2   :  { %s3073_s20 = smov 0   ;;  %s3075_s21 = smov 0  }
   0x3 LB: > { %s3090_s22 = sadd.s32 4294967295, %s3027_s21   ;;  %s2532_s23 = sadd.s32 4294967294, %s3027_s21   ;;  %s3027_s21 = sphi %s3075_s21, %s4736_s21   ;;  %s3023_s20 = sphi %s3073_s20, %s4735_s20   ;;  %s3019_s19 = sphi %s3071_s19, %s4734_s19   ;;  %s3015_s18 = sphi %s3069_s18, %s4733_s18  }
   0x4   : > { %s3094_s24 = sadd.s32 1, %s3027_s21   ;;  %s145_s25 = sadd.s32 1, %s3023_s20 }
   0x5   : > { %s142_s26 = ssub.s32 %s3027_s21, %s3094_s24  ;;  %p155_p0 = scmp.ne.s32.totalorder %s3023_s20, %s3019_s19 }
   0x6   : > { %p143_p1 = scmp.eq.s32.totalorder %s142_s26, 0  ;;  %p156_p2 = scmp.eq.s32.totalorder %s3090_s22, 3 }
   0x7   : > { %p161_p3 = scmp.ne.s32.totalorder %s3019_s19, %s3015_s18  ;;  %p162_p4 = scmp.eq.s32.totalorder %s2532_s23, 3 }
   0x8   : > { %s3105_s27 = scalar_select %p143_p1, %s3023_s20, %s145_s25  }
   0x9   : > { %p3107_p5 = por %p156_p2, %p155_p0  ;;  %p3111_p6 = por %p162_p4, %p161_p3 }
   0xa   : > { %p2535_p7 = scmp.ge.s32.totalorder %s3027_s21, 1  ;;  %p213_p8 = scmp.lt.s32.totalorder %s3027_s21, 5 }
   0xc   : > { %p214_p9 = pnand %p2535_p7, %p213_p8 }
   0xd   : > { %v2892_v0 = vld [vmem:[%s4696_s3] sm:$0xff] (!%p214_p9)   ;;  %s2537_s7 = sshll.u32 (!%p214_p9), %s3090_s22, 4  ;;  %v3029_v1 = vmov (!%p214_p9), 0   ;;  %vm2086_vm0 = vcmask (!%p214_p9), 130048   ;;  %v3030_v43 = vmov (!%p214_p9), 683565275  }
   0xe   : > { %217 = sbr.rel (%p214_p9) target bundleno = 631 (0x277), region = 40  ;;  %p252_p10 = scmp.lt.s32.totalorder (!%p214_p9), %s2537_s7, 63  ;;  %2758 = vmatprep.subr.bf16.mxu0 (!%p214_p9), %v2892_v0  ;;  %2776 = vmatprep.subr.bf16.mxu1 (!%p214_p9), %v2892_v0  ;;  %v3031_v45 = vmov (!%p214_p9), 2475754826   ;;  %v3032_v47 = vmov (!%p214_p9), 2131351028  }
   0xf   : > { %2759 = vmatpush3.bf16.msra.mxu0 (!%p214_p9), %v2892_v0  ;;  %2777 = vmatpush3.bf16.msra.mxu1 (!%p214_p9), %v2892_v0  ;;  %v3033_v49 = vmov (!%p214_p9), 2102212464   ;;  %v3034_v51 = vmov (!%p214_p9), 920167782   ;;  %v3035_v59 = vmov (!%p214_p9), 1326507024  }
  0x10   : > { %2891 = vset.pattern.permute.xlu1 (!%p214_p9), %v3029_v1  ;;  %2890 = vset.pattern.permute.xlu0 (!%p214_p9), %v3029_v1  ;;  %s248_s30 = sand.u32 (!%p214_p9), 1, %s3019_s19  }
  0x11   : > { %s2536_s6 = sshll.u32 (!%p214_p9), %s248_s30, 6  ;;  %s4652_s13 = scalar_lea.sflag (!%p214_p9), [#allocation3], %s248_s30 }
  0x15   : > { %s4738_s7 = smov (!%p252_p10, %s2537_s7), 63 }
  0x16   : > { %s2538_s8 = sshll.u32 %s4738_s7, 2  ;;  %s2540_s12 = sshll.u32 %s4738_s7, 3 }
  0x17   : > { %s255_s11 = scalar_lea.vmem %s4693_s0, %s2538_s8  ;;  %s3136_s15 = scalar_lea.vmem %s4694_s1, %s2540_s12 }
  0x18   : > { %v2893_v2 = vld [vmem:[%s255_s11] sm:$0xff]   ;;  %v2894_v3 = vld [vmem:[%s255_s11 + $0x8] sm:$0xff]   ;;  %v2895_v4 = vld [vmem:[%s255_s11 + $0x10] sm:$0xff]   ;;  %s4451_s26 = scalar_lea.vmem %s4695_s2, %s2538_s8  ;;  %s4548_s7 = scalar_lea.vmem [#allocation2], %s2536_s6 }
  0x19   : > { %2760 = vmatprep.mubr.msk.bf16.mxu0 %vm2086_vm0, %v2893_v2  ;;  %v2897_v5 = vld [vmem:[%s255_s11 + $0x20] sm:$0xff]   ;;  %v2898_v6 = vld [vmem:[%s255_s11 + $0x28] sm:$0xff]   ;;  %v2899_v7 = vld [vmem:[%s255_s11 + $0x30] sm:$0xff]   ;;  %s2662_s8 = sshll.u32 %s3090_s22, 10  ;;  %s2446_s9 = sshll.u32 %s4548_s7, 4  ;;  %s4647_s9 = int_to_ptr.vmem [resolvable:$true] %s2446_s9 }
  0x1a   : > { %2761 = vmatmul.mubr.msk.bf16.vlgmr.msra.gmra.mrb[0].mxu0 %vm2086_vm0, %v2894_v3  ;;  %2768 = vmatprep.mubr.msk.bf16.mxu1 %vm2086_vm0, %v2897_v5  ;;  %v2896_v8 = vld [vmem:[%s255_s11 + $0x18] sm:$0xff]   ;;  %v3142_v9 = vld [vmem:[%s3136_s15 + $0x10] sm:$0xff]  ;;  %v3145_v10 = vld [vmem:[%s3136_s15] sm:$0xff]  ;;  %s4645_s12 = scalar_lea.hbm %s4698_s5, %s2662_s8  ;;  %s2965_s14 = scalar_lea.vmem %s4647_s9, 1024 }
  0x1b   : > { %2764 = vmatprep.mubr.msk.bf16.mxu0 %vm2086_vm0, %v2895_v4  ;;  %2769 = vmatmul.mubr.msk.bf16.vlgmr.msra.gmra.mrb[0].mxu1 %vm2086_vm0, %v2898_v6  ;;  %v3148_v11 = vld [vmem:[%s3136_s15 + $0x18] sm:$0xff]  ;;  %v3151_v12 = vmul.f32 0.62831855, %v3142_v9  ;;  %v3154_v13 = vmul.f32 0.62831855, %v3145_v10  ;;  %p2966_p11 = scmp.ne.s32.totalorder %s4647_s9, %s2965_s14  ;;  %s3036_s22 = smov [#allocation2]  }
  0x1c   : > { %2772 = vmatprep.mubr.msk.bf16.mxu1 %vm2086_vm0, %v2899_v7  ;;  %v3157_v14 = vmul.f32 0.62831855, %v3148_v11  ;;  %v2900_v15 = vld [vmem:[%s255_s11 + $0x38] sm:$0xff]  }
  0x1d   : > { %v509_v16 = vand.u32 2147483647, %v3151_v12  ;;  %v512_v17 = vand.u32 2139095040, %v3151_v12  ;;  %v303_v18 = vand.u32 2147483647, %v3154_v13  ;;  %v306_v19 = vand.u32 2139095040, %v3154_v13  ;;  %p2967_p12 = pnand %p2966_p11, %p3107_p5 }
  0x1e   : > { %v615_v24 = vand.u32 2139095040, %v3157_v14  ;;  %v612_v37 = vand.u32 2147483647, %v3157_v14  ;;  %vm511_vm15 = vcmp.lt.s32.totalorder %v3151_v12, 0 }
  0x1f   : > { %v513_v20 = vshrl.u32 %v512_v17, 23  ;;  %v516_v21 = vand.u32 8388607, %v509_v16  ;;  %v307_v22 = vshrl.u32 %v306_v19, 23  ;;  %v310_v23 = vand.u32 8388607, %v303_v18  ;;  %p2968_p13 = pneg %p2967_p12 }
  0x20   : > { %v616_v27 = vshrl.u32 %v615_v24, 23 }
  0x21   : > { %v2551_v25 = vadd.s32 4294967169, %v513_v20  ;;  %v2543_v26 = vadd.s32 4294967169, %v307_v22  ;;  %v517_v29 = vor.u32 8388608, %v516_v21  ;;  %v311_v30 = vor.u32 8388608, %v310_v23 }
  0x22   : > { %2765 = vmatmul.mubr.msk.bf16.gmra.mrb[4].mxu0 %vm2086_vm0, %v2896_v8  ;;  %v2555_v32 = vadd.s32 4294967169, %v616_v27 }
  0x23   : > { %2773 = vmatmul.mubr.msk.bf16.gmra.mrb[4].mxu1 %vm2086_vm0, %v2900_v15  ;;  %v519_v28 = vadd.s32 1, %v2551_v25  ;;  %v313_v31 = vadd.s32 1, %v2543_v26  ;;  %v3171_v38 = vshll.u32 %v517_v29, 8  ;;  %v3173_v40 = vshll.u32 %v311_v30, 8 }
  0x24   : > { %v3175_v41 = vadd.s32 1, %v2555_v32 }
  0x25   : > { %vm520_vm1 = vcmp.gt.s32.totalorder %v519_v28, 0  ;;  %vm314_vm2 = vcmp.gt.s32.totalorder %v313_v31, 0 }
  0x26   : > { %v521_v33 = vsel %vm520_vm1, %v519_v28, 0  ;;  %v315_v36 = vsel %vm314_vm2, %v313_v31, 0  ;;  %vm623_vm7 = vcmp.gt.s32.totalorder %v3175_v41, 0 }
  0x27   : > { %v522_v34 = vshrl.u32 %v521_v33, 5  ;;  %v523_v35 = vand.u32 31, %v521_v33  ;;  %v317_v39 = vand.u32 31, %v315_v36  ;;  %v3182_v53 = vshrl.u32 %v315_v36, 5 }
  0x29   : > { %v524_v42 = vsub.s32 32, %v523_v35  ;;  %v526_v44 = vshll.u32 %v3030_v43, %v523_v35  ;;  %v529_v46 = vshll.u32 %v3031_v45, %v523_v35  ;;  %v532_v48 = vshll.u32 %v3032_v47, %v523_v35 }
  0x2a   : > { %v535_v50 = vshll.u32 %v3033_v49, %v523_v35  ;;  %v538_v52 = vshll.u32 %v3034_v51, %v523_v35  ;;  %vm541_vm3 = vcmp.lt.s32.totalorder %v522_v34, 1  ;;  %vm542_vm4 = vcmp.lt.s32.totalorder %v522_v34, 2 }
  0x2b   : > { %v525_v54 = vshrl.u32 %v3030_v43, %v524_v42  ;;  %v527_v55 = vshrl.u32 %v3031_v45, %v524_v42  ;;  %v530_v56 = vshrl.u32 %v3032_v47, %v524_v42  ;;  %v533_v57 = vshrl.u32 %v3033_v49, %v524_v42 }
  0x2c   : > { %v536_v58 = vshrl.u32 %v3034_v51, %v524_v42  ;;  %v539_v60 = vshrl.u32 %v3035_v59, %v524_v42  ;;  %vm544_vm5 = vcmp.lt.s32.totalorder %v522_v34, 4  ;;  %v318_v0 = vsub.s32 32, %v317_v39 }
  0x2d   : > { %v528_v61 = vor.u32 %v527_v55, %v526_v44  ;;  %v531_v62 = vor.u32 %v530_v56, %v529_v46  ;;  %v534_v63 = vor.u32 %v533_v57, %v532_v48  ;;  %vm543_vm6 = vcmp.lt.s32.totalorder %v522_v34, 3 }
  0x2e   : > { %v537_v1 = vor.u32 %v536_v58, %v535_v50  ;;  %v540_v2 = vor.u32 %v539_v60, %v538_v52  ;;  %v320_v3 = vshll.u32 %v3030_v43, %v317_v39  ;;  %v323_v19 = vshll.u32 %v3031_v45, %v317_v39 }
  0x2f   : > { %v545_v4 = vsel %vm541_vm3, %v525_v54, %v528_v61  ;;  %v546_v5 = vsel %vm544_vm5, %v534_v63, 2102212464  ;;  %v549_v6 = vsel %vm541_vm3, %v528_v61, %v531_v62  ;;  %v553_v7 = vsel %vm541_vm3, %v531_v62, %v534_v63 }
  0x30   : > { %v547_v8 = vsel %vm543_vm6, %v531_v62, %v546_v5  ;;  %v550_v15 = vsel %vm544_vm5, %v537_v1, 920167782  ;;  %v554_v17 = vsel %vm544_vm5, %v540_v2, 1326507024  ;;  %v319_v22 = vshrl.u32 %v3030_v43, %v318_v0 }
  0x31   : > { %v551_v20 = vsel %vm543_vm6, %v534_v63, %v550_v15  ;;  %v555_v21 = vsel %vm543_vm6, %v537_v1, %v554_v17  ;;  %v321_v23 = vshrl.u32 %v3031_v45, %v318_v0  ;;  %v548_v24 = vsel %vm542_vm4, %v545_v4, %v547_v8  ;;  %v3231_v1 = vld [vmem:[%s3136_s15 + $0x8] sm:$0xff] }
  0x32   : > { %v552_v25 = vsel %vm542_vm4, %v549_v6, %v551_v20  ;;  %v556_v26 = vsel %vm542_vm4, %v553_v7, %v555_v21  ;;  %v324_v27 = vshrl.u32 %v3032_v47, %v318_v0  ;;  %v326_v35 = vshll.u32 %v3032_v47, %v317_v39 }
  0x33   : > { %v3203_v28 = vmul.u32.u64.low %v3171_v38, %v556_v26  ;;  %v3204_v29 = vmul.u32.u64.high %v3171_v38, %v556_v26, %v3203_v28  ;;  %v3207_v30 = vmul.u32.u64.low %v3171_v38, %v552_v25  ;;  %v3208_v31 = vmul.u32.u64.high %v3171_v38, %v552_v25, %v3207_v30 }
  0x34   : > { %v322_v32 = vor.u32 %v321_v23, %v320_v3  ;;  %v325_v33 = vor.u32 %v324_v27, %v323_v19  ;;  %v327_v36 = vshrl.u32 %v3033_v49, %v318_v0  ;;  %v329_v34 = vshll.u32 %v3033_v49, %v317_v39 }
  0x35   : > { %v330_v42 = vshrl.u32 %v3034_v51, %v318_v0  ;;  %v332_v44 = vshll.u32 %v3034_v51, %v317_v39  ;;  %v333_v46 = vshrl.u32 %v3035_v59, %v318_v0  ;;  %v564_v48 = vmul.u32 %v3171_v38, %v548_v24 }
  0x36   : > { %v328_v50 = vor.u32 %v327_v36, %v326_v35  ;;  %vm335_vm8 = vcmp.lt.s32.totalorder %v3182_v53, 1  ;;  %vm336_vm9 = vcmp.lt.s32.totalorder %v3182_v53, 2  ;;  %vm566_vm10 = vc.u32 %v3204_v29, %v3207_v30 }
  0x37   : > { %v567_v52 = vadd.s32 1, %v3208_v31  ;;  %v331_v54 = vor.u32 %v330_v42, %v329_v34  ;;  %vm337_vm11 = vcmp.lt.s32.totalorder %v3182_v53, 3  ;;  %v334_v55 = vor.u32 %v333_v46, %v332_v44 }
  0x38   : > { %vm338_vm12 = vcmp.lt.s32.totalorder %v3182_v53, 4  ;;  %v339_v39 = vsel %vm335_vm8, %v319_v22, %v322_v32  ;;  %v343_v56 = vsel %vm335_vm8, %v322_v32, %v325_v33  ;;  %v347_v60 = vsel %vm335_vm8, %v325_v33, %v328_v50 }
  0x39   : > { %v568_v38 = vsel %vm566_vm10, %v567_v52, %v3208_v31  ;;  %v340_v57 = vsel %vm338_vm12, %v328_v50, 2102212464  ;;  %v344_v58 = vsel %vm338_vm12, %v331_v54, 920167782  ;;  %v348_v0 = vsel %vm338_vm12, %v334_v55, 1326507024 }
  0x3a   : > { %v569_v61 = vadd.s32 %v568_v38, %v564_v48  ;;  %v341_v62 = vsel %vm337_vm11, %v325_v33, %v340_v57  ;;  %v345_v63 = vsel %vm337_vm11, %v328_v50, %v344_v58  ;;  %v349_v4 = vsel %vm337_vm11, %v331_v54, %v348_v0 }
  0x3b   : > { %v342_v2 = vsel %vm336_vm9, %v339_v39, %v341_v62  ;;  %v346_v3 = vsel %vm336_vm9, %v343_v56, %v345_v63  ;;  %v624_v5 = vsel %vm623_vm7, %v3175_v41, 0  ;;  %v350_v7 = vsel %vm336_vm9, %v347_v60, %v349_v4 }
  0x3c   : > { %v570_v6 = vadd.s32 536870912, %v569_v61  ;;  %v3245_v8 = vmul.u32.u64.low %v3173_v40, %v346_v3  ;;  %v3246_v15 = vmul.u32.u64.high %v3173_v40, %v346_v3, %v3245_v8  ;;  %v619_v20 = vand.u32 8388607, %v612_v37 }
  0x3d   : > { %v3250_v17 = vmul.u32.u64.low %v3173_v40, %v350_v7  ;;  %v3251_v19 = vmul.u32.u64.high %v3173_v40, %v350_v7, %v3250_v17  ;;  %v3256_v21 = vmul.f32 0.62831855, %v3231_v1  ;;  %v626_v22 = vand.u32 31, %v624_v5 }
  0x3e   : > { %v3258_v41 = vshrl.u32 %v570_v6, 30  ;;  %v358_v53 = vmul.u32 %v3173_v40, %v342_v2  ;;  %v361_v24 = vadd.s32 1, %v3246_v15  ;;  %v620_v26 = vor.u32 8388608, %v619_v20 }
  0x3f   : > { %v627_v25 = vsub.s32 32, %v626_v22  ;;  %vm360_vm13 = vc.u32 %v3251_v19, %v3245_v8  ;;  %v409_v27 = vand.u32 2139095040, %v3256_v21  ;;  %v3269_v32 = vshrl.u32 %v624_v5, 5 }
  0x40   : > { %v572_v23 = vshll.u32 %v3258_v41, 30  ;;  %v362_v31 = vsel %vm360_vm13, %v361_v24, %v3246_v15  ;;  %v629_v40 = vshll.u32 %v3030_v43, %v626_v22  ;;  %v632_v36 = vshll.u32 %v3031_v45, %v626_v22 }
  0x41   : > { %v363_v33 = vadd.s32 %v362_v31, %v358_v53  ;;  %v630_v35 = vshrl.u32 %v3031_v45, %v627_v25  ;;  %v633_v42 = vshrl.u32 %v3032_v47, %v627_v25  ;;  %v635_v44 = vshll.u32 %v3032_v47, %v626_v22 }
  0x42   : > { %v3266_v28 = vsub.s32 %v569_v61, %v572_v23  ;;  %v636_v46 = vshrl.u32 %v3033_v49, %v627_v25  ;;  %v638_v50 = vshll.u32 %v3033_v49, %v626_v22  ;;  %v3279_v52 = vshll.u32 %v620_v26, 8 }
  0x43   : > { %v364_v48 = vadd.s32 536870912, %v363_v33  ;;  %v410_v54 = vshrl.u32 %v409_v27, 23  ;;  %v565_v55 = vadd.s32 %v3207_v30, %v3204_v29  ;;  %v628_v56 = vshrl.u32 %v3030_v43, %v627_v25 }
  0x44   : > { %v575_v34 = vsub.s32 0, %v3266_v28  ;;  %vm647_vm14 = vcmp.lt.s32.totalorder %v3269_v32, 4  ;;  %v631_v57 = vor.u32 %v630_v35, %v629_v40  ;;  %v639_v58 = vshrl.u32 %v3034_v51, %v627_v25 }
  0x45   : > { %v3287_v38 = vshrl.u32 %v364_v48, 30  ;;  %v641_v60 = vshll.u32 %v3034_v51, %v626_v22  ;;  %v634_v62 = vor.u32 %v633_v42, %v632_v36  ;;  %v637_v63 = vor.u32 %v636_v46, %v635_v44 }
  0x46   : > { %v2552_v39 = vmin.u32 %v575_v34, %v3266_v28  ;;  %v642_v29 = vshrl.u32 %v3035_v59, %v627_v25  ;;  %v640_v0 = vor.u32 %v639_v58, %v638_v50  ;;  %vm644_vm0 = vcmp.lt.s32.totalorder %v3269_v32, 1 }
  0x47   : > { %v366_v30 = vshll.u32 %v3287_v38, 30  ;;  %vm646_vm1 = vcmp.lt.s32.totalorder %v3269_v32, 3  ;;  %vm645_vm2 = vcmp.lt.s32.totalorder %v3269_v32, 2  ;;  %v649_v4 = vsel %vm647_vm14, %v637_v63, 2102212464 }
  0x48   : > { %v577_v61 = vclz %v2552_v39  ;;  %v643_v3 = vor.u32 %v642_v29, %v641_v60  ;;  %vm3300_vm3 = vcmp.le.f32.partialorder %v509_v16, 0.7853982  ;;  %v595_v6 = vsub.s32 4, %v3258_v41 }
  0x49   : > { %v3305_v7 = vsub.s32 %v363_v33, %v366_v30  ;;  %v648_v15 = vsel %vm644_vm0, %v628_v56, %v631_v57  ;;  %v653_v17 = vsel %vm647_vm14, %v640_v0, 920167782  ;;  %v652_v20 = vsel %vm644_vm0, %v631_v57, %v634_v62 }
  0x4a   : > { %v2553_v2 = vadd.s32 4294967294, %v577_v61  ;;  %v654_v16 = vsel %vm646_vm1, %v637_v63, %v653_v17  ;;  %v657_v22 = vsel %vm647_vm14, %v643_v3, 1326507024  ;;  %v650_v24 = vsel %vm646_vm1, %v634_v62, %v649_v4 }
  0x4b   : > { %v369_v23 = vsub.s32 0, %v3305_v7  ;;  %v656_v25 = vsel %vm644_vm0, %v634_v62, %v637_v63  ;;  %vm305_vm5 = vcmp.lt.s32.totalorder %v3154_v13, 0  ;;  %v658_v33 = vsel %vm646_vm1, %v640_v0, %v657_v22 }
  0x4c   : > { %vm2554_vm4 = vcmp.lt.s32.totalorder %v2553_v2, 0  ;;  %v655_v35 = vsel %vm645_vm2, %v652_v20, %v654_v16  ;;  %v406_v36 = vand.u32 2147483647, %v3256_v21  ;;  %v2547_v34 = vadd.s32 4294967169, %v410_v54 }
  0x4d   : > { %v580_v53 = vsel %vm2554_vm4, 0, %v2553_v2  ;;  %v2544_v40 = vmin.u32 %v369_v23, %v3305_v7  ;;  %v659_v46 = vsel %vm645_vm2, %v656_v25, %v658_v33  ;;  %v651_v50 = vsel %vm645_vm2, %v648_v15, %v650_v24 }
  0x4e   : > { %v581_v26 = vsub.s32 32, %v580_v53  ;;  %v582_v27 = vshll.u32 %v3266_v28, %v580_v53  ;;  %v585_v31 = vsub.s32 4294967266, %v580_v53  ;;  %v596_v28 = vsel %vm511_vm15, %v595_v6, %v3258_v41 }
  0x4f   : > { %v371_v48 = vclz %v2544_v40  ;;  %v3338_v39 = vmul.u32.u64.low %v3279_v52, %v659_v46  ;;  %v3339_v56 = vmul.u32.u64.high %v3279_v52, %v659_v46, %v3338_v39  ;;  %v389_v41 = vsub.s32 4, %v3287_v38 }
  0x50   : > { %v583_v42 = vshrl.u32 %v565_v55, %v581_v26  ;;  %v586_v44 = vadd.s32 127, %v585_v31  ;;  %v3342_v54 = vmul.u32.u64.low %v3279_v52, %v655_v35  ;;  %v3343_v55 = vmul.u32.u64.high %v3279_v52, %v655_v35, %v3342_v54 }
  0x51   : > { %v2545_v60 = vadd.s32 4294967294, %v371_v48  ;;  %v3349_v61 = vand.u32 8388607, %v406_v36  ;;  %v416_v32 = vadd.s32 1, %v2547_v34  ;;  %v598_v29 = vsel %vm3300_vm3, 0, %v596_v28 }
  0x52   : > { %v584_v57 = vor.u32 %v583_v42, %v582_v27  ;;  %v587_v58 = vshll.u32 %v586_v44, 23  ;;  %v359_v30 = vadd.s32 %v3245_v8, %v3251_v19  ;;  %v667_v0 = vmul.u32 %v3279_v52, %v651_v50 }
  0x53   : > { %vm2546_vm6 = vcmp.lt.s32.totalorder %v2545_v60, 0  ;;  %vm669_vm7 = vc.u32 %v3339_v56, %v3342_v54  ;;  %vm417_vm8 = vcmp.gt.s32.totalorder %v416_v32, 0  ;;  %v670_v4 = vadd.s32 1, %v3343_v55 }
  0x54   : > { %v588_v62 = vor.u32 4788187, %v587_v58  ;;  %v591_v63 = vcvt.s32.f32 %v584_v57  ;;  %v374_v3 = vsel %vm2546_vm6, 0, %v2545_v60  ;;  %v418_v6 = vsel %vm417_vm8, %v416_v32, 0 }
  0x55   : > { %v375_v15 = vsub.s32 32, %v374_v3  ;;  %v376_v17 = vshll.u32 %v3305_v7, %v374_v3  ;;  %v379_v20 = vsub.s32 4294967266, %v374_v3  ;;  %v390_v8 = vsel %vm305_vm5, %v389_v41, %v3287_v38 }
  0x56   : > { %v589_v2 = vand.u32 2147483647, %v588_v62  ;;  %vm3365_vm9 = vcmp.le.f32.partialorder %v303_v18, 0.7853982  ;;  %v671_v16 = vsel %vm669_vm7, %v670_v4, %v3343_v55  ;;  %v420_v22 = vand.u32 31, %v418_v6 }
  0x57   : > { %v3370_v53 = vand.u32 3, %v598_v29  ;;  %v377_v23 = vshrl.u32 %v359_v30, %v375_v15  ;;  %v380_v24 = vadd.s32 127, %v379_v20  ;;  %v672_v7 = vadd.s32 %v671_v16, %v667_v0 }
  0x58   : > { %v592_v19 = vmul.f32 %v591_v63, %v589_v2  ;;  %v392_v26 = vsel %vm3365_vm9, 0, %v390_v8  ;;  %v414_v38 = vor.u32 8388608, %v3349_v61  ;;  %v421_v27 = vsub.s32 32, %v420_v22  ;;  %v3395_v63 = vld [vmem:[%s3136_s15 + $0x28] sm:$0xff] }
  0x59   : > { %v378_v31 = vor.u32 %v377_v23, %v376_v17  ;;  %v381_v18 = vshll.u32 %v380_v24, 23  ;;  %v673_v33 = vadd.s32 536870912, %v672_v7  ;;  %v423_v40 = vshll.u32 %v3030_v43, %v420_v22 }
  0x5a   : > { %v593_v25 = vxor.u32 2147483648, %v592_v19  ;;  %v424_v34 = vshrl.u32 %v3031_v45, %v421_v27  ;;  %v426_v42 = vshll.u32 %v3031_v45, %v420_v22  ;;  %v427_v44 = vshrl.u32 %v3032_v47, %v421_v27 }
  0x5b   : > { %v382_v46 = vor.u32 4788187, %v381_v18  ;;  %v385_v48 = vcvt.s32.f32 %v378_v31  ;;  %v3384_v50 = vshrl.u32 %v673_v33, 30  ;;  %v419_v39 = vshrl.u32 %v418_v6, 5 }
  0x5c   : > { %v594_v35 = vsel %vm511_vm15, %v593_v25, %v592_v19  ;;  %v429_v57 = vshll.u32 %v3032_v47, %v420_v22  ;;  %v430_v58 = vshrl.u32 %v3033_v49, %v421_v27  ;;  %v422_v41 = vshrl.u32 %v3030_v43, %v421_v27 }
  0x5d   : > { %v597_v28 = vsel %vm3300_vm3, %v3151_v12, %v594_v35  ;;  %v383_v55 = vand.u32 2147483647, %v382_v46  ;;  %v675_v60 = vshll.u32 %v3384_v50, 30  ;;  %vm607_vm10 = vcmp.eq.s32.totalorder %v3370_v53, 2 }
  0x5e   : > { %2901 = vcosq.f32 %v597_v28  ;;  %v425_v5 = vor.u32 %v424_v34, %v423_v40  ;;  %v432_v61 = vshll.u32 %v3033_v49, %v420_v22  ;;  %v433_v32 = vshrl.u32 %v3034_v51, %v421_v27 }
  0x5f   : > { %2903 = vsinq.f32 %v597_v28  ;;  %v435_v62 = vshll.u32 %v3034_v51, %v420_v22  ;;  %vm604_vm11 = vcmp.eq.s32.totalorder %v3370_v53, 0  ;;  %v386_v29 = vmul.f32 %v385_v48, %v383_v55 }
  0x60   : > { %v3398_v30 = vsub.s32 %v672_v7, %v675_v60  ;;  %v428_v0 = vor.u32 %v427_v44, %v426_v42  ;;  %v436_v2 = vshrl.u32 %v3035_v59, %v421_v27  ;;  %vm603_vm12 = vcmp.lt.s32.totalorder %v3370_v53, 2 }
  0x61   : > { %v3402_v3 = vand.u32 3, %v392_v26  ;;  %v431_v4 = vor.u32 %v430_v58, %v429_v57  ;;  %v434_v6 = vor.u32 %v433_v32, %v432_v61  ;;  %vm438_vm13 = vcmp.lt.s32.totalorder %v419_v39, 1 }
  0x62   : > { %vm601_vm14 = vweird.f32 %v3151_v12  ;;  %v387_v15 = vxor.u32 2147483648, %v386_v29  ;;  %v678_v17 = vsub.s32 0, %v3398_v30  ;;  %v3406_v20 = vshll.u32 %v414_v38, 8 }
  0x63   : > { %v3409_v8 = vmul.f32 0.62831855, %v3395_v63  ;;  %v437_v19 = vor.u32 %v436_v2, %v435_v62  ;;  %vm439_vm15 = vcmp.lt.s32.totalorder %v419_v39, 2  ;;  %vm440_vm0 = vcmp.lt.s32.totalorder %v419_v39, 3 }
  0x64   : > { %vm441_vm1 = vcmp.lt.s32.totalorder %v419_v39, 4  ;;  %v388_v16 = vsel %vm305_vm5, %v387_v15, %v386_v29  ;;  %v2556_v22 = vmin.u32 %v678_v17, %v3398_v30  ;;  %v442_v23 = vsel %vm438_vm13, %v422_v41, %v425_v5 }
  0x65   : > { %v446_v24 = vsel %vm438_vm13, %v425_v5, %v428_v0  ;;  %v391_v7 = vsel %vm3365_vm9, %v3154_v13, %v388_v16  ;;  %v443_v25 = vsel %vm441_vm1, %v431_v4, 2102212464  ;;  %v447_v26 = vsel %vm441_vm1, %v434_v6, 920167782 }
  0x66   : > { %v450_v38 = vsel %vm438_vm13, %v428_v0, %v431_v4  ;;  %2905 = vcosq.f32 %v391_v7  ;;  %v680_v27 = vclz %v2556_v22  ;;  %v444_v31 = vsel %vm440_vm0, %v428_v0, %v443_v25 }
  0x67   : > { %v448_v18 = vsel %vm440_vm0, %v431_v4, %v447_v26  ;;  %vm1985_vm2 = vcmp.lt.f32.partialorder %v3142_v9, 5.0  ;;  %2907 = vsinq.f32 %v391_v7  ;;  %v668_v52 = vadd.s32 %v3342_v54, %v3339_v56 }
  0x68   : > { %v2902_v33 = vpop.eup %2901  ;;  %v449_v40 = vsel %vm439_vm15, %v446_v24, %v448_v18  ;;  %v451_v35 = vsel %vm441_vm1, %v437_v19, 1326507024  ;;  %v2557_v44 = vadd.s32 4294967294, %v680_v27  ;;  %v445_v28 = vsel %vm439_vm15, %v442_v23, %v444_v31 }
  0x69   : > { %v2904_v34 = vpop.eup %2903  ;;  %v608_v42 = vxor.u32 2147483648, %v2902_v33  ;;  %v452_v46 = vsel %vm440_vm0, %v434_v6, %v451_v35  ;;  %v3433_v58 = vmul.u32.u64.low %v3406_v20, %v449_v40  ;;  %v3434_v55 = vmul.u32.u64.high %v3406_v20, %v449_v40, %v3433_v58 }
  0x6a   : > { %v605_v48 = vxor.u32 2147483648, %v2904_v34  ;;  %v453_v57 = vsel %vm439_vm15, %v450_v38, %v452_v46  ;;  %vm2558_vm3 = vcmp.lt.s32.totalorder %v2557_v44, 0  ;;  %vm395_vm4 = vweird.f32 %v3154_v13 }
  0x6b   : > { %v609_v56 = vsel %vm607_vm10, %v608_v42, %v2904_v34  ;;  %v3440_v54 = vmul.u32.u64.low %v3406_v20, %v453_v57  ;;  %v3441_v60 = vmul.u32.u64.high %v3406_v20, %v453_v57, %v3440_v54  ;;  %vm397_vm5 = vcmp.lt.s32.totalorder %v3402_v3, 2 }
  0x6c   : > { %v606_v41 = vsel %vm604_vm11, %v2902_v33, %v605_v48  ;;  %vm614_vm6 = vcmp.lt.s32.totalorder %v3157_v14, 0  ;;  %v683_v39 = vsel %vm2558_vm3, 0, %v2557_v44  ;;  %v461_v0 = vmul.u32 %v3406_v20, %v445_v28 }
  0x6d   : > { %v610_v5 = vsel %vm603_vm12, %v606_v41, %v609_v56  ;;  %v684_v61 = vsub.s32 32, %v683_v39  ;;  %v685_v32 = vshll.u32 %v3398_v30, %v683_v39  ;;  %v688_v62 = vsub.s32 4294967266, %v683_v39  ;;  %v3491_v41 = vld [vmem:[%s3136_s15 + $0x20] sm:$0xff] }
  0x6e   : > { %v611_v29 = vsel %vm601_vm14, nan, %v610_v5  ;;  %v464_v2 = vadd.s32 1, %v3434_v55  ;;  %v821_v4 = vand.u32 2139095040, %v3409_v8  ;;  %vm398_vm7 = vcmp.eq.s32.totalorder %v3402_v3, 0 }
  0x6f   : > { %v1953_v6 = vadd.f32 1.0, %v611_v29  ;;  %v686_v15 = vshrl.u32 %v668_v52, %v684_v61  ;;  %v689_v17 = vadd.s32 127, %v688_v62  ;;  %vm401_vm8 = vcmp.eq.s32.totalorder %v3402_v3, 2 }
  0x70   : > { %v698_v53 = vsub.s32 4, %v3384_v50  ;;  %vm463_vm9 = vc.u32 %v3441_v60, %v3433_v58  ;;  %v822_v12 = vshrl.u32 %v821_v4, 23  ;;  %v2906_v30 = vpop.eup %2905  ;;  %v818_v25 = vand.u32 2147483647, %v3409_v8 }
  0x71   : > { %v1969_v19 = vmul.f32 0.5, %v1953_v6  ;;  %v687_v20 = vor.u32 %v686_v15, %v685_v32  ;;  %v690_v16 = vshll.u32 %v689_v17, 23  ;;  %v465_v22 = vsel %vm463_vm9, %v464_v2, %v3434_v55  ;;  %v2908_v23 = vpop.eup %2907 }
  0x72   : > { %v402_v24 = vxor.u32 2147483648, %v2906_v30  ;;  %v466_v7 = vadd.s32 %v465_v22, %v461_v0  ;;  %v2563_v26 = vadd.s32 4294967169, %v822_v12  ;;  %v399_v27 = vxor.u32 2147483648, %v2908_v23 }
  0x73   : > { %v2001_v38 = vsel %vm1985_vm2, %v1969_v19, 0.0  ;;  %v691_v31 = vor.u32 4788187, %v690_v16  ;;  %v694_v18 = vcvt.s32.f32 %v687_v20  ;;  %v699_v52 = vsel %vm614_vm6, %v698_v53, %v3384_v50 }
  0x74   : > { %2220 = vperm.xlu1 %2891, %v2001_v38   ;;  %v403_v33 = vsel %vm401_vm8, %v402_v24, %v2908_v23  ;;  %v467_v40 = vadd.s32 536870912, %v466_v7  ;;  %v828_v35 = vadd.s32 1, %v2563_v26  ;;  %v400_v34 = vsel %vm398_vm7, %v2906_v30, %v399_v27 }
  0x75   : > { %vm3474_vm10 = vcmp.le.f32.partialorder %v612_v37, 0.7853982  ;;  %v692_v42 = vand.u32 2147483647, %v691_v31  ;;  %v404_v44 = vsel %vm397_vm5, %v400_v34, %v403_v33  ;;  %v825_v50 = vand.u32 8388607, %v818_v25 }
  0x76   : > { %v3480_v28 = vshrl.u32 %v467_v40, 30  ;;  %vm829_vm11 = vcmp.gt.s32.totalorder %v828_v35, 0  ;;  %v405_v46 = vsel %vm395_vm4, nan, %v404_v44  ;;  %v701_v37 = vsel %vm3474_vm10, 0, %v699_v52 }
  0x77   : > { %v695_v48 = vmul.f32 %v694_v18, %v692_v42  ;;  %v830_v57 = vsel %vm829_vm11, %v828_v35, 0  ;;  %v1951_v55 = vadd.f32 1.0, %v405_v46  ;;  %vm1983_vm12 = vcmp.lt.f32.partialorder %v3145_v10, 5.0 }
  0x78   : > { %v469_v56 = vshll.u32 %v3480_v28, 30  ;;  %v832_v54 = vand.u32 31, %v830_v57  ;;  %v3493_v5 = vand.u32 3, %v701_v37  ;;  %v826_v13 = vor.u32 8388608, %v825_v50 }
  0x79   : > { %v696_v3 = vxor.u32 2147483648, %v695_v48  ;;  %v1967_v39 = vmul.f32 0.5, %v1951_v55  ;;  %v3499_v62 = vshrl.u32 %v830_v57, 5  ;;  %v3507_v6 = vmul.f32 0.62831855, %v3491_v41 }
  0x7a   : > { %v3495_v61 = vsub.s32 %v466_v7, %v469_v56  ;;  %v833_v29 = vsub.s32 32, %v832_v54  ;;  %v835_v0 = vshll.u32 %v3030_v43, %v832_v54  ;;  %v462_v15 = vadd.s32 %v3433_v58, %v3441_v60 }
  0x7b   : > { %v697_v32 = vsel %vm614_vm6, %v696_v3, %v695_v48  ;;  %v1999_v2 = vsel %vm1983_vm12, %v1967_v39, 0.0  ;;  %v838_v53 = vshll.u32 %v3031_v45, %v832_v54  ;;  %v3514_v30 = vshll.u32 %v826_v13, 8 }
  0x7c   : > { %v700_v10 = vsel %vm3474_vm10, %v3157_v14, %v697_v32  ;;  %v472_v4 = vsub.s32 0, %v3495_v61  ;;  %2210 = vperm.xlu0 %2890, %v1999_v2   ;;  %v836_v17 = vshrl.u32 %v3031_v45, %v833_v29  ;;  %v715_v19 = vand.u32 2147483647, %v3507_v6 }
  0x7d   : > { %2909 = vcosq.f32 %v700_v10  ;;  %vm710_vm13 = vcmp.eq.s32.totalorder %v3493_v5, 2  ;;  %v839_v16 = vshrl.u32 %v3032_v47, %v833_v29  ;;  %v841_v22 = vshll.u32 %v3032_v47, %v832_v54 }
  0x7e   : > { %2911 = vsinq.f32 %v700_v10  ;;  %v2548_v12 = vmin.u32 %v472_v4, %v3495_v61  ;;  %v837_v20 = vor.u32 %v836_v17, %v835_v0  ;;  %vm850_vm14 = vcmp.lt.s32.totalorder %v3499_v62, 1 }
  0x7f   : > { %vm707_vm15 = vcmp.eq.s32.totalorder %v3493_v5, 0  ;;  %v842_v60 = vshrl.u32 %v3033_v49, %v833_v29  ;;  %v844_v23 = vshll.u32 %v3033_v49, %v832_v54  ;;  %v845_v24 = vshrl.u32 %v3034_v51, %v833_v29 }
  0x80   : > { %v474_v58 = vclz %v2548_v12  ;;  %vm706_vm0 = vcmp.lt.s32.totalorder %v3493_v5, 2  ;;  %v834_v7 = vshrl.u32 %v3030_v43, %v833_v29  ;;  %v840_v26 = vor.u32 %v839_v16, %v838_v53 }
  0x81   : > { %v847_v38 = vshll.u32 %v3034_v51, %v832_v54  ;;  %v848_v27 = vshrl.u32 %v3035_v59, %v833_v29  ;;  %vm704_vm1 = vweird.f32 %v3157_v14  ;;  %v843_v18 = vor.u32 %v842_v60, %v841_v22 }
  0x82   : > { %v2549_v31 = vadd.s32 4294967294, %v474_v58  ;;  %v846_v33 = vor.u32 %v845_v24, %v844_v23  ;;  %vm852_vm2 = vcmp.lt.s32.totalorder %v3499_v62, 3  ;;  %v492_v52 = vsub.s32 4, %v3480_v28 }
  0x83   : > { %v849_v40 = vor.u32 %v848_v27, %v847_v38  ;;  %vm851_vm3 = vcmp.lt.s32.totalorder %v3499_v62, 2  ;;  %vm853_vm4 = vcmp.lt.s32.totalorder %v3499_v62, 4  ;;  %v858_v34 = vsel %vm850_vm14, %v837_v20, %v840_v26 }
  0x84   : > { %vm2550_vm5 = vcmp.lt.s32.totalorder %v2549_v31, 0  ;;  %v855_v35 = vsel %vm853_vm4, %v843_v18, 2102212464  ;;  %v859_v9 = vsel %vm853_vm4, %v846_v33, 920167782  ;;  %v862_v50 = vsel %vm850_vm14, %v840_v26, %v843_v18 }
  0x85   : > { %v477_v42 = vsel %vm2550_vm5, 0, %v2549_v31  ;;  %v860_v44 = vsel %vm852_vm2, %v843_v18, %v859_v9  ;;  %v863_v46 = vsel %vm853_vm4, %v849_v40, 1326507024  ;;  %v854_v55 = vsel %vm850_vm14, %v834_v7, %v837_v20  ;;  %v3581_v40 = vld [vmem:[%s3136_s15 + $0x38] sm:$0xff] }
  0x86   : > { %v478_v48 = vsub.s32 32, %v477_v42  ;;  %v479_v37 = vshll.u32 %v3495_v61, %v477_v42  ;;  %v482_v57 = vsub.s32 4294967266, %v477_v42  ;;  %v856_v3 = vsel %vm852_vm2, %v840_v26, %v855_v35 }
  0x87   : > { %v2910_v56 = vpop.eup %2909  ;;  %v861_v54 = vsel %vm851_vm3, %v858_v34, %v860_v44  ;;  %v864_v39 = vsel %vm852_vm2, %v846_v33, %v863_v46  ;;  %v718_v13 = vand.u32 2139095040, %v3507_v6  ;;  %v857_v22 = vsel %vm851_vm3, %v854_v55, %v856_v3 }
  0x88   : > { %v2912_v32 = vpop.eup %2911  ;;  %v711_v29 = vxor.u32 2147483648, %v2910_v56  ;;  %v480_v0 = vshrl.u32 %v462_v15, %v478_v48  ;;  %v483_v61 = vadd.s32 127, %v482_v57  ;;  %v865_v2 = vsel %vm851_vm3, %v862_v50, %v864_v39 }
  0x89   : > { %v708_v10 = vxor.u32 2147483648, %v2912_v32  ;;  %v3553_v4 = vmul.u32.u64.low %v3514_v30, %v865_v2  ;;  %v3554_v17 = vmul.u32.u64.high %v3514_v30, %v865_v2, %v3553_v4  ;;  %v719_v53 = vshrl.u32 %v718_v13, 23 }
  0x8a   : > { %v712_v12 = vsel %vm710_vm13, %v711_v29, %v2912_v32  ;;  %v481_v20 = vor.u32 %v480_v0, %v479_v37  ;;  %v484_v16 = vshll.u32 %v483_v61, 23  ;;  %vm408_vm6 = vcmp.lt.s32.totalorder %v3256_v21, 0 }
  0x8b   : > { %v709_v15 = vsel %vm707_vm15, %v2910_v56, %v708_v10  ;;  %v3563_v58 = vmul.u32.u64.low %v3514_v30, %v861_v54  ;;  %v3564_v60 = vmul.u32.u64.high %v3514_v30, %v861_v54, %v3563_v58  ;;  %v2559_v23 = vadd.s32 4294967169, %v719_v53 }
  0x8c   : > { %v713_v24 = vsel %vm706_vm0, %v709_v15, %v712_v12  ;;  %v485_v7 = vor.u32 4788187, %v484_v16  ;;  %v488_v26 = vcvt.s32.f32 %v481_v20  ;;  %v493_v38 = vsel %vm408_vm6, %v492_v52, %v3480_v28 }
  0x8d   : > { %v714_v62 = vsel %vm704_vm1, nan, %v713_v24  ;;  %v873_v27 = vmul.u32 %v3514_v30, %v857_v22  ;;  %v725_v31 = vadd.s32 1, %v2559_v23  ;;  %vm875_vm7 = vc.u32 %v3554_v17, %v3563_v58 }
  0x8e   : > { %v1954_v18 = vadd.f32 1.0, %v714_v62  ;;  %v486_v33 = vand.u32 2147483647, %v485_v7  ;;  %v722_v5 = vand.u32 8388607, %v715_v19  ;;  %vm1986_vm8 = vcmp.lt.f32.partialorder %v3148_v11, 5.0 }
  0x8f   : > { %v876_v14 = vadd.s32 1, %v3564_v60  ;;  %vm726_vm9 = vcmp.gt.s32.totalorder %v725_v31, 0  ;;  %vm3587_vm10 = vcmp.le.f32.partialorder %v406_v36, 0.7853982  ;;  %v3595_v11 = vmul.f32 0.62831855, %v3581_v40 }
  0x90   : > { %v1970_v35 = vmul.f32 0.5, %v1954_v18  ;;  %v489_v30 = vmul.f32 %v488_v26, %v486_v33  ;;  %v727_v52 = vsel %vm726_vm9, %v725_v31, 0  ;;  %v495_v34 = vsel %vm3587_vm10, 0, %v493_v38 }
  0x91   : > { %v877_v9 = vsel %vm875_vm7, %v876_v14, %v3564_v60  ;;  %v729_v42 = vand.u32 31, %v727_v52  ;;  %v723_v48 = vor.u32 8388608, %v722_v5  ;;  %v728_v36 = vshrl.u32 %v727_v52, 5 }
  0x92   : > { %v2002_v44 = vsel %vm1986_vm8, %v1970_v35, 0.0  ;;  %v490_v50 = vxor.u32 2147483648, %v489_v30  ;;  %v878_v46 = vadd.s32 %v877_v9, %v873_v27  ;;  %v1027_v15 = vand.u32 2139095040, %v3595_v11 }
  0x93   : > { %2225 = vperm.xlu1 %2891, %v2002_v44   ;;  %v730_v37 = vsub.s32 32, %v729_v42  ;;  %v732_v57 = vshll.u32 %v3030_v43, %v729_v42  ;;  %v735_v55 = vshll.u32 %v3031_v45, %v729_v42  ;;  %v738_v54 = vshll.u32 %v3032_v47, %v729_v42 }
  0x94   : > { %v491_v56 = vsel %vm408_vm6, %v490_v50, %v489_v30  ;;  %v879_v3 = vadd.s32 536870912, %v878_v46  ;;  %v741_v39 = vshll.u32 %v3033_v49, %v729_v42  ;;  %v744_v0 = vshll.u32 %v3034_v51, %v729_v42 }
  0x95   : > { %v494_v13 = vsel %vm3587_vm10, %v3256_v21, %v491_v56  ;;  %v733_v32 = vshrl.u32 %v3031_v45, %v730_v37  ;;  %v736_v29 = vshrl.u32 %v3032_v47, %v730_v37  ;;  %v739_v2 = vshrl.u32 %v3033_v49, %v730_v37 }
  0x96   : > { %2913 = vcosq.f32 %v494_v13  ;;  %v3609_v61 = vshrl.u32 %v879_v3, 30  ;;  %v742_v10 = vshrl.u32 %v3034_v51, %v730_v37  ;;  %v745_v12 = vshrl.u32 %v3035_v59, %v730_v37 }
  0x97   : > { %2915 = vsinq.f32 %v494_v13  ;;  %v734_v4 = vor.u32 %v733_v32, %v732_v57  ;;  %v737_v53 = vor.u32 %v736_v29, %v735_v55  ;;  %v740_v16 = vor.u32 %v739_v2, %v738_v54 }
  0x98   : > { %v881_v20 = vshll.u32 %v3609_v61, 30  ;;  %v743_v22 = vor.u32 %v742_v10, %v741_v39  ;;  %v499_v60 = vand.u32 3, %v495_v34  ;;  %v746_v23 = vor.u32 %v745_v12, %v744_v0 }
  0x99   : > { %vm747_vm11 = vcmp.lt.s32.totalorder %v728_v36, 1  ;;  %vm749_vm12 = vcmp.lt.s32.totalorder %v728_v36, 3  ;;  %v731_v7 = vshrl.u32 %v3030_v43, %v730_v37  ;;  %vm748_vm13 = vcmp.lt.s32.totalorder %v728_v36, 2 }
  0x9a   : > { %v3616_v24 = vsub.s32 %v878_v46, %v881_v20  ;;  %vm750_vm14 = vcmp.lt.s32.totalorder %v728_v36, 4  ;;  %v755_v62 = vsel %vm747_vm11, %v734_v4, %v737_v53  ;;  %v763_v27 = vshll.u32 %v723_v48, 8 }
  0x9b   : > { %v752_v26 = vsel %vm750_vm14, %v740_v16, 2102212464  ;;  %v756_v38 = vsel %vm750_vm14, %v743_v22, 920167782  ;;  %v1028_v33 = vshrl.u32 %v1027_v15, 23  ;;  %v759_v14 = vsel %vm747_vm11, %v737_v53, %v740_v16 }
  0x9c   : > { %v884_v31 = vsub.s32 0, %v3616_v24  ;;  %v757_v18 = vsel %vm749_vm12, %v740_v16, %v756_v38  ;;  %v760_v35 = vsel %vm750_vm14, %v746_v23, 1326507024  ;;  %v751_v30 = vsel %vm747_vm11, %v731_v7, %v734_v4 }
  0x9d   : > { %v758_v5 = vsel %vm748_vm13, %v755_v62, %v757_v18  ;;  %v753_v52 = vsel %vm749_vm12, %v737_v53, %v752_v26  ;;  %vm501_vm15 = vcmp.eq.s32.totalorder %v499_v60, 0  ;;  %v761_v34 = vsel %vm749_vm12, %v743_v22, %v760_v35 }
  0x9e   : > { %v2564_v28 = vmin.u32 %v884_v31, %v3616_v24  ;;  %v3628_v9 = vmul.u32.u64.low %v763_v27, %v758_v5  ;;  %v3629_v42 = vmul.u32.u64.high %v763_v27, %v758_v5, %v3628_v9  ;;  %vm504_vm0 = vcmp.eq.s32.totalorder %v499_v60, 2 }
  0x9f   : > { %v762_v46 = vsel %vm748_vm13, %v759_v14, %v761_v34  ;;  %v2571_v48 = vadd.s32 4294967169, %v1028_v33  ;;  %v754_v55 = vsel %vm748_vm13, %v751_v30, %v753_v52  ;;  %vm500_vm1 = vcmp.lt.s32.totalorder %v499_v60, 2 }
  0xa0   : > { %v2914_v44 = vpop.eup %2913  ;;  %v886_v50 = vclz %v2564_v28  ;;  %v3634_v56 = vmul.u32.u64.low %v763_v27, %v762_v46  ;;  %v3635_v3 = vmul.u32.u64.high %v763_v27, %v762_v46, %v3634_v56  ;;  %vm498_vm2 = vweird.f32 %v3256_v21 }
  0xa1   : > { %v2916_v37 = vpop.eup %2915  ;;  %v505_v57 = vxor.u32 2147483648, %v2914_v44  ;;  %v1034_v13 = vadd.s32 1, %v2571_v48  ;;  %v874_v29 = vadd.s32 %v3563_v58, %v3554_v17  ;;  %v773_v0 = vadd.s32 1, %v3629_v42 }
  0xa2   : > { %v502_v54 = vxor.u32 2147483648, %v2916_v37  ;;  %v2565_v39 = vadd.s32 4294967294, %v886_v50  ;;  %v770_v36 = vmul.u32 %v763_v27, %v754_v55  ;;  %v904_v53 = vsub.s32 4, %v3609_v61 }
  0xa3   : > { %v506_v32 = vsel %vm504_vm0, %v505_v57, %v2916_v37  ;;  %vm1035_vm4 = vcmp.gt.s32.totalorder %v1034_v13, 0  ;;  %vm772_vm5 = vc.u32 %v3635_v3, %v3628_v9  ;;  %v1024_v22 = vand.u32 2147483647, %v3595_v11 }
  0xa4   : > { %v503_v2 = vsel %vm501_vm15, %v2914_v44, %v502_v54  ;;  %vm2566_vm3 = vcmp.lt.s32.totalorder %v2565_v39, 0  ;;  %v774_v58 = vsel %vm772_vm5, %v773_v0, %v3629_v42  ;;  %v1036_v15 = vsel %vm1035_vm4, %v1034_v13, 0 }
  0xa5   : > { %v507_v10 = vsel %vm500_vm1, %v503_v2, %v506_v32  ;;  %v889_v4 = vsel %vm2566_vm3, 0, %v2565_v39  ;;  %vm1984_vm6 = vcmp.lt.f32.partialorder %v3231_v1, 5.0  ;;  %v775_v7 = vadd.s32 %v774_v58, %v770_v36 }
  0xa6   : > { %v508_v12 = vsel %vm498_vm2, nan, %v507_v10  ;;  %v890_v21 = vsub.s32 32, %v889_v4  ;;  %v891_v20 = vshll.u32 %v3616_v24, %v889_v4  ;;  %v894_v16 = vsub.s32 4294967266, %v889_v4 }
  0xa7   : > { %v1952_v17 = vadd.f32 1.0, %v508_v12  ;;  %vm820_vm7 = vcmp.lt.s32.totalorder %v3409_v8, 0  ;;  %v1038_v62 = vand.u32 31, %v1036_v15  ;;  %v776_v31 = vadd.s32 536870912, %v775_v7 }
  0xa8   : > { %v892_v60 = vshrl.u32 %v874_v29, %v890_v21  ;;  %v895_v23 = vadd.s32 127, %v894_v16  ;;  %v905_v24 = vsel %vm820_vm7, %v904_v53, %v3609_v61  ;;  %v1031_v33 = vand.u32 8388607, %v1024_v22  ;;  %v3681_v53 = vld [vmem:[%s3136_s15 + $0x30] sm:$0xff] }
  0xa9   : > { %v1968_v26 = vmul.f32 0.5, %v1952_v17  ;;  %v1039_v5 = vsub.s32 32, %v1038_v62  ;;  %v1041_v1 = vshll.u32 %v3030_v43, %v1038_v62  ;;  %v3656_v28 = vshrl.u32 %v776_v31, 30 }
  0xaa   : > { %v893_v38 = vor.u32 %v892_v60, %v891_v20  ;;  %v896_v27 = vshll.u32 %v895_v23, 23  ;;  %v1044_v30 = vshll.u32 %v3031_v45, %v1038_v62  ;;  %v1037_v52 = vshrl.u32 %v1036_v15, 5 }
  0xab   : > { %v2000_v18 = vsel %vm1984_vm6, %v1968_v26, 0.0  ;;  %v1042_v34 = vshrl.u32 %v3031_v45, %v1039_v5  ;;  %v1045_v61 = vshrl.u32 %v3032_v47, %v1039_v5  ;;  %v1047_v42 = vshll.u32 %v3032_v47, %v1038_v62 }
  0xac   : > { %2215 = vperm.xlu0 %2890, %v2000_v18   ;;  %v897_v14 = vor.u32 4788187, %v896_v27  ;;  %v900_v35 = vcvt.s32.f32 %v893_v38  ;;  %v778_v50 = vshll.u32 %v3656_v28, 30  ;;  %v1048_v46 = vshrl.u32 %v3033_v49, %v1039_v5 }
  0xad   : > { %v1050_v48 = vshll.u32 %v3033_v49, %v1038_v62  ;;  %vm3667_vm8 = vcmp.le.f32.partialorder %v818_v25, 0.7853982  ;;  %v1032_v57 = vor.u32 8388608, %v1031_v33  ;;  %v1043_v55 = vor.u32 %v1042_v34, %v1041_v1 }
  0xae   : > { %v898_v44 = vand.u32 2147483647, %v897_v14  ;;  %v1051_v56 = vshrl.u32 %v3034_v51, %v1039_v5  ;;  %v3672_v39 = vsub.s32 %v775_v7, %v778_v50  ;;  %v1046_v13 = vor.u32 %v1045_v61, %v1044_v30 }
  0xaf   : > { %v1053_v32 = vshll.u32 %v3034_v51, %v1038_v62  ;;  %v907_v29 = vsel %vm3667_vm8, 0, %v905_v24  ;;  %v1054_v25 = vshrl.u32 %v3035_v59, %v1039_v5  ;;  %vm1056_vm9 = vcmp.lt.s32.totalorder %v1037_v52, 1 }
  0xb0   : > { %v901_v54 = vmul.f32 %v900_v35, %v898_v44  ;;  %v1052_v0 = vor.u32 %v1051_v56, %v1050_v48  ;;  %v781_v36 = vsub.s32 0, %v3672_v39  ;;  %v1040_v10 = vshrl.u32 %v3030_v43, %v1039_v5 }
  0xb1   : > { %v1049_v4 = vor.u32 %v1048_v46, %v1047_v42  ;;  %vm1057_vm10 = vcmp.lt.s32.totalorder %v1037_v52, 2  ;;  %vm1058_vm11 = vcmp.lt.s32.totalorder %v1037_v52, 3  ;;  %vm1059_vm12 = vcmp.lt.s32.totalorder %v1037_v52, 4 }
  0xb2   : > { %v902_v2 = vxor.u32 2147483648, %v901_v54  ;;  %v1072_v12 = vshll.u32 %v1032_v57, 8  ;;  %v2560_v20 = vmin.u32 %v781_v36, %v3672_v39  ;;  %v1055_v16 = vor.u32 %v1054_v25, %v1053_v32 }
  0xb3   : > { %v1064_v17 = vsel %vm1056_vm9, %v1043_v55, %v1046_v13  ;;  %v1061_v15 = vsel %vm1059_vm12, %v1049_v4, 2102212464  ;;  %v1065_v60 = vsel %vm1059_vm12, %v1052_v0, 920167782  ;;  %v3693_v23 = vmul.f32 0.62831855, %v3681_v53 }
  0xb4   : > { %v903_v21 = vsel %vm820_vm7, %v902_v2, %v901_v54  ;;  %v783_v7 = vclz %v2560_v20  ;;  %v1060_v26 = vsel %vm1056_vm9, %v1040_v10, %v1043_v55  ;;  %v1066_v62 = vsel %vm1058_vm11, %v1049_v4, %v1065_v60 }
  0xb5   : > { %v906_v58 = vsel %vm3667_vm8, %v3409_v8, %v903_v21  ;;  %v1062_v38 = vsel %vm1058_vm11, %v1046_v13, %v1061_v15  ;;  %v1067_v27 = vsel %vm1057_vm10, %v1064_v17, %v1066_v62  ;;  %v1068_v24 = vsel %vm1056_vm9, %v1046_v13, %v1049_v4  ;;  %v3739_v62 = vld [vmem:[%s3136_s15 + $0x48] sm:$0xff] }
  0xb6   : > { %2917 = vcosq.f32 %v906_v58  ;;  %v2561_v31 = vadd.s32 4294967294, %v783_v7  ;;  %v1069_v18 = vsel %vm1059_vm12, %v1055_v16, 1326507024  ;;  %v911_v1 = vand.u32 3, %v907_v29 }
  0xb7   : > { %2919 = vsinq.f32 %v906_v58  ;;  %v3701_v33 = vmul.u32.u64.low %v1072_v12, %v1067_v27  ;;  %v3702_v5 = vmul.u32.u64.high %v1072_v12, %v1067_v27, %v3701_v33  ;;  %v771_v14 = vadd.s32 %v3628_v9, %v3635_v3 }
  0xb8   : > { %v1070_v35 = vsel %vm1058_vm11, %v1052_v0, %v1069_v18  ;;  %v924_v30 = vand.u32 2139095040, %v3693_v23  ;;  %vm2562_vm13 = vcmp.lt.s32.totalorder %v2561_v31, 0  ;;  %v801_v34 = vsub.s32 4, %v3656_v28 }
  0xb9   : > { %v1063_v61 = vsel %vm1057_vm10, %v1060_v26, %v1062_v38  ;;  %v1071_v42 = vsel %vm1057_vm10, %v1068_v24, %v1070_v35  ;;  %vm910_vm14 = vweird.f32 %v3409_v8  ;;  %v786_v44 = vsel %vm2562_vm13, 0, %v2561_v31 }
  0xba   : > { %v3713_v50 = vmul.u32.u64.low %v1072_v12, %v1071_v42  ;;  %v3714_v46 = vmul.u32.u64.high %v1072_v12, %v1071_v42, %v3713_v50  ;;  %v925_v48 = vshrl.u32 %v924_v30, 23  ;;  %v787_v37 = vsub.s32 32, %v786_v44 }
  0xbb   : > { %v788_v9 = vshll.u32 %v3672_v39, %v786_v44  ;;  %v791_v3 = vsub.s32 4294967266, %v786_v44  ;;  %v1082_v57 = vadd.s32 1, %v3702_v5  ;;  %vm3720_vm15 = vcmp.le.f32.partialorder %v715_v19, 0.7853982 }
  0xbc   : > { %v1079_v52 = vmul.u32 %v1072_v12, %v1063_v61  ;;  %v921_v56 = vand.u32 2147483647, %v3693_v23  ;;  %v2567_v54 = vadd.s32 4294967169, %v925_v48  ;;  %vm912_vm0 = vcmp.lt.s32.totalorder %v911_v1, 2 }
  0xbd   : > { %vm717_vm1 = vcmp.lt.s32.totalorder %v3507_v6, 0  ;;  %v789_v13 = vshrl.u32 %v771_v14, %v787_v37  ;;  %v792_v32 = vadd.s32 127, %v791_v3  ;;  %vm913_vm2 = vcmp.eq.s32.totalorder %v911_v1, 0 }
  0xbe   : > { %vm916_vm3 = vcmp.eq.s32.totalorder %v911_v1, 2  ;;  %vm1081_vm4 = vc.u32 %v3714_v46, %v3701_v33  ;;  %v931_v39 = vadd.s32 1, %v2567_v54  ;;  %v802_v25 = vsel %vm717_vm1, %v801_v34, %v3656_v28 }
  0xbf   : > { %v790_v19 = vor.u32 %v789_v13, %v788_v9  ;;  %v793_v0 = vshll.u32 %v792_v32, 23  ;;  %v1083_v2 = vsel %vm1081_vm4, %v1082_v57, %v3702_v5  ;;  %v928_v12 = vand.u32 8388607, %v921_v56 }
  0xc0   : > { %v2918_v29 = vpop.eup %2917  ;;  %v1084_v4 = vadd.s32 %v1083_v2, %v1079_v52  ;;  %vm932_vm5 = vcmp.gt.s32.totalorder %v931_v39, 0  ;;  %v804_v15 = vsel %vm3720_vm15, 0, %v802_v25  ;;  %vm1988_vm6 = vcmp.lt.f32.partialorder %v3395_v63, 5.0 }
  0xc1   : > { %v2920_v36 = vpop.eup %2919  ;;  %v917_v10 = vxor.u32 2147483648, %v2918_v29  ;;  %v794_v20 = vor.u32 4788187, %v793_v0  ;;  %v797_v16 = vcvt.s32.f32 %v790_v19  ;;  %v933_v17 = vsel %vm932_vm5, %v931_v39, 0 }
  0xc2   : > { %v914_v21 = vxor.u32 2147483648, %v2920_v36  ;;  %v1085_v28 = vadd.s32 536870912, %v1084_v4  ;;  %v935_v60 = vand.u32 31, %v933_v17  ;;  %v3747_v5 = vand.u32 3, %v804_v15 }
  0xc3   : > { %v918_v58 = vsel %vm916_vm3, %v917_v10, %v2920_v36  ;;  %v795_v26 = vand.u32 2147483647, %v794_v20  ;;  %v929_v14 = vor.u32 8388608, %v928_v12  ;;  %v3752_v1 = vmul.f32 0.62831855, %v3739_v62 }
  0xc4   : > { %v915_v7 = vsel %vm913_vm2, %v2918_v29, %v914_v21  ;;  %v3743_v27 = vshrl.u32 %v1085_v28, 30  ;;  %v936_v24 = vsub.s32 32, %v935_v60  ;;  %v938_v34 = vshll.u32 %v3030_v43, %v935_v60 }
  0xc5   : > { %v919_v38 = vsel %vm912_vm0, %v915_v7, %v918_v58  ;;  %v798_v18 = vmul.f32 %v797_v16, %v795_v26  ;;  %v941_v44 = vshll.u32 %v3031_v45, %v935_v60  ;;  %v944_v37 = vshll.u32 %v3032_v47, %v935_v60 }
  0xc6   : > { %v920_v31 = vsel %vm910_vm14, nan, %v919_v38  ;;  %v1087_v30 = vshll.u32 %v3743_v27, 30  ;;  %v939_v42 = vshrl.u32 %v3031_v45, %v936_v24  ;;  %v942_v8 = vshrl.u32 %v3032_v47, %v936_v24 }
  0xc7   : > { %v1956_v35 = vadd.f32 1.0, %v920_v31  ;;  %v799_v61 = vxor.u32 2147483648, %v798_v18  ;;  %v945_v9 = vshrl.u32 %v3033_v49, %v936_v24  ;;  %v934_v57 = vshrl.u32 %v933_v17, 5 }
  0xc8   : > { %v3757_v48 = vsub.s32 %v1084_v4, %v1087_v30  ;;  %v937_v52 = vshrl.u32 %v3030_v43, %v936_v24  ;;  %v947_v54 = vshll.u32 %v3033_v49, %v935_v60  ;;  %v940_v29 = vor.u32 %v939_v42, %v938_v34 }
  0xc9   : > { %v1972_v50 = vmul.f32 0.5, %v1956_v35  ;;  %v800_v3 = vsel %vm717_vm1, %v799_v61, %v798_v18  ;;  %v943_v19 = vor.u32 %v942_v8, %v941_v44  ;;  %v948_v0 = vshrl.u32 %v3034_v51, %v936_v24 }
  0xca   : > { %v803_v32 = vsel %vm3720_vm15, %v3507_v6, %v800_v3  ;;  %v1090_v39 = vsub.s32 0, %v3757_v48  ;;  %v950_v25 = vshll.u32 %v3034_v51, %v935_v60  ;;  %v946_v36 = vor.u32 %v945_v9, %v944_v37 }
  0xcb   : > { %v2004_v13 = vsel %vm1988_vm6, %v1972_v50, 0.0  ;;  %2921 = vcosq.f32 %v803_v32  ;;  %v3774_v63 = vshll.u32 %v929_v14, 8  ;;  %v949_v10 = vor.u32 %v948_v0, %v947_v54 }
  0xcc   : > { %2235 = vperm.xlu1 %2891, %v2004_v13   ;;  %2923 = vsinq.f32 %v803_v32  ;;  %v2572_v2 = vmin.u32 %v1090_v39, %v3757_v48  ;;  %v951_v55 = vshrl.u32 %v3035_v59, %v936_v24  ;;  %vm953_vm7 = vcmp.lt.s32.totalorder %v934_v57, 1 }
  0xcd   : > { %v1233_v4 = vand.u32 2139095040, %v3752_v1  ;;  %vm810_vm8 = vcmp.eq.s32.totalorder %v3747_v5, 0  ;;  %vm954_vm9 = vcmp.lt.s32.totalorder %v934_v57, 2  ;;  %vm955_vm10 = vcmp.lt.s32.totalorder %v934_v57, 3 }
  0xce   : > { %v1092_v12 = vclz %v2572_v2  ;;  %vm956_vm11 = vcmp.lt.s32.totalorder %v934_v57, 4  ;;  %vm809_vm12 = vcmp.lt.s32.totalorder %v3747_v5, 2  ;;  %v952_v21 = vor.u32 %v951_v55, %v950_v25 }
  0xcf   : > { %v957_v20 = vsel %vm953_vm7, %v937_v52, %v940_v29  ;;  %v958_v16 = vsel %vm956_vm11, %v946_v36, 2102212464  ;;  %v961_v17 = vsel %vm953_vm7, %v940_v29, %v943_v19  ;;  %vm807_vm13 = vweird.f32 %v3507_v6 }
  0xd0   : > { %v2573_v58 = vadd.s32 4294967294, %v1092_v12  ;;  %v959_v15 = vsel %vm955_vm10, %v943_v19, %v958_v16  ;;  %v962_v28 = vsel %vm956_vm11, %v949_v10, 920167782  ;;  %v965_v60 = vsel %vm953_vm7, %v943_v19, %v946_v36 }
  0xd1   : > { %v1080_v7 = vadd.s32 %v3701_v33, %v3714_v46  ;;  %v963_v26 = vsel %vm955_vm10, %v946_v36, %v962_v28  ;;  %v966_v38 = vsel %vm956_vm11, %v952_v21, 1326507024  ;;  %v1234_v24 = vshrl.u32 %v1233_v4, 23 }
  0xd2   : > { %vm2574_vm14 = vcmp.lt.s32.totalorder %v2573_v58, 0  ;;  %v960_v31 = vsel %vm954_vm9, %v957_v20, %v959_v15  ;;  %v964_v18 = vsel %vm954_vm9, %v961_v17, %v963_v26  ;;  %v967_v14 = vsel %vm955_vm10, %v949_v10, %v966_v38 }
  0xd3   : > { %v1095_v35 = vsel %vm2574_vm14, 0, %v2573_v58  ;;  %v968_v30 = vsel %vm954_vm9, %v965_v60, %v967_v14  ;;  %v3793_v34 = vmul.u32.u64.low %v3774_v63, %v964_v18  ;;  %v3794_v61 = vmul.u32.u64.high %v3774_v63, %v964_v18, %v3793_v34 }
  0xd4   : > { %v1096_v33 = vsub.s32 32, %v1095_v35  ;;  %v1097_v46 = vshll.u32 %v3757_v48, %v1095_v35  ;;  %v1100_v42 = vsub.s32 4294967266, %v1095_v35  ;;  %v2579_v44 = vadd.s32 4294967169, %v1234_v24 }
  0xd5   : > { %v2922_v8 = vpop.eup %2921  ;;  %vm813_vm15 = vcmp.eq.s32.totalorder %v3747_v5, 2  ;;  %vm1987_vm0 = vcmp.lt.f32.partialorder %v3491_v41, 5.0  ;;  %v3801_v50 = vmul.u32.u64.low %v3774_v63, %v968_v30  ;;  %v3802_v37 = vmul.u32.u64.high %v3774_v63, %v968_v30, %v3801_v50 }
  0xd6   : > { %v1230_v9 = vand.u32 2147483647, %v3752_v1  ;;  %v2924_v3 = vpop.eup %2923  ;;  %v814_v57 = vxor.u32 2147483648, %v2922_v8  ;;  %v1098_v52 = vshrl.u32 %v1080_v7, %v1096_v33  ;;  %v1101_v54 = vadd.s32 127, %v1100_v42 }
  0xd7   : > { %v1240_v13 = vadd.s32 1, %v2579_v44  ;;  %v811_v32 = vxor.u32 2147483648, %v2924_v3  ;;  %v1110_v48 = vsub.s32 4, %v3743_v27  ;;  %v976_v39 = vmul.u32 %v3774_v63, %v960_v31 }
  0xd8   : > { %v979_v29 = vadd.s32 1, %v3794_v61  ;;  %v815_v19 = vsel %vm813_vm15, %v814_v57, %v2924_v3  ;;  %v1099_v0 = vor.u32 %v1098_v52, %v1097_v46  ;;  %v1102_v25 = vshll.u32 %v1101_v54, 23  ;;  %v3849_v57 = vld [vmem:[%s3136_s15 + $0x40] sm:$0xff] }
  0xd9   : > { %vm1241_vm1 = vcmp.gt.s32.totalorder %v1240_v13, 0  ;;  %v812_v2 = vsel %vm810_vm8, %v2922_v8, %v811_v32  ;;  %vm1026_vm2 = vcmp.lt.s32.totalorder %v3595_v11, 0  ;;  %vm978_vm3 = vc.u32 %v3802_v37, %v3793_v34 }
  0xda   : > { %v1242_v36 = vsel %vm1241_vm1, %v1240_v13, 0  ;;  %v816_v10 = vsel %vm809_vm12, %v812_v2, %v815_v19  ;;  %v1103_v55 = vor.u32 4788187, %v1102_v25  ;;  %v1106_v63 = vcvt.s32.f32 %v1099_v0 }
  0xdb   : > { %v980_v4 = vsel %vm978_vm3, %v979_v29, %v3794_v61  ;;  %v817_v12 = vsel %vm807_vm13, nan, %v816_v10  ;;  %vm3820_vm4 = vcmp.le.f32.partialorder %v1024_v22, 0.7853982  ;;  %v1244_v16 = vand.u32 31, %v1242_v36 }
  0xdc   : > { %v981_v20 = vadd.s32 %v980_v4, %v976_v39  ;;  %v1955_v17 = vadd.f32 1.0, %v817_v12  ;;  %v1104_v58 = vand.u32 2147483647, %v1103_v55  ;;  %v1111_v5 = vsel %vm1026_vm2, %v1110_v48, %v3743_v27 }
  0xdd   : > { %v1237_v15 = vand.u32 8388607, %v1230_v9  ;;  %v1243_v6 = vshrl.u32 %v1242_v36, 5  ;;  %v1245_v60 = vsub.s32 32, %v1244_v16  ;;  %v1247_v7 = vshll.u32 %v3030_v43, %v1244_v16 }
  0xde   : > { %v982_v28 = vadd.s32 536870912, %v981_v20  ;;  %v1971_v22 = vmul.f32 0.5, %v1955_v17  ;;  %v1107_v26 = vmul.f32 %v1106_v63, %v1104_v58  ;;  %v1250_v38 = vshll.u32 %v3031_v45, %v1244_v16 }
  0xdf   : > { %v1253_v24 = vshll.u32 %v3032_v47, %v1244_v16  ;;  %v1248_v18 = vshrl.u32 %v3031_v45, %v1245_v60  ;;  %v1251_v27 = vshrl.u32 %v3032_v47, %v1245_v60  ;;  %v1256_v14 = vshll.u32 %v3033_v49, %v1244_v16 }
  0xe0   : > { %v3832_v31 = vshrl.u32 %v982_v28, 30  ;;  %v2003_v35 = vsel %vm1987_vm0, %v1971_v22, 0.0  ;;  %v1108_v30 = vxor.u32 2147483648, %v1107_v26  ;;  %v1254_v61 = vshrl.u32 %v3033_v49, %v1245_v60 }
  0xe1   : > { %v1257_v33 = vshrl.u32 %v3034_v51, %v1245_v60  ;;  %2230 = vperm.xlu0 %2890, %v2003_v35   ;;  %v1113_v46 = vsel %vm3820_vm4, 0, %v1111_v5  ;;  %v1238_v44 = vor.u32 8388608, %v1237_v15  ;;  %v1246_v50 = vshrl.u32 %v3030_v43, %v1245_v60  ;;  %v3863_v5 = vld [vmem:[%s3136_s15 + $0x58] sm:$0xff] }
  0xe2   : > { %v984_v42 = vshll.u32 %v3832_v31, 30  ;;  %v1109_v8 = vsel %vm1026_vm2, %v1108_v30, %v1107_v26  ;;  %v1249_v3 = vor.u32 %v1248_v18, %v1247_v7  ;;  %v1259_v41 = vshll.u32 %v3034_v51, %v1244_v16 }
  0xe3   : > { %v1112_v52 = vsel %vm3820_vm4, %v3595_v11, %v1109_v8  ;;  %v1252_v13 = vor.u32 %v1251_v27, %v1250_v38  ;;  %v1260_v32 = vshrl.u32 %v3035_v59, %v1245_v60  ;;  %v1255_v48 = vor.u32 %v1254_v61, %v1253_v24 }
  0xe4   : > { %v3854_v54 = vsub.s32 %v981_v20, %v984_v42  ;;  %2925 = vcosq.f32 %v1112_v52  ;;  %v1258_v39 = vor.u32 %v1257_v33, %v1256_v14  ;;  %vm1262_vm5 = vcmp.lt.s32.totalorder %v1243_v6, 1 }
  0xe5   : > { %2927 = vsinq.f32 %v1112_v52  ;;  %v1261_v19 = vor.u32 %v1260_v32, %v1259_v41  ;;  %v3859_v0 = vmul.f32 0.62831855, %v3849_v57  ;;  %v1117_v25 = vand.u32 3, %v1113_v46 }
  0xe6   : > { %v987_v29 = vsub.s32 0, %v3854_v54  ;;  %vm1264_vm6 = vcmp.lt.s32.totalorder %v1243_v6, 3  ;;  %vm1265_vm7 = vcmp.lt.s32.totalorder %v1243_v6, 4  ;;  %v1278_v2 = vshll.u32 %v1238_v44, 8 }
  0xe7   : > { %vm1263_vm8 = vcmp.lt.s32.totalorder %v1243_v6, 2  ;;  %v1266_v10 = vsel %vm1262_vm5, %v1246_v50, %v1249_v3  ;;  %v1270_v55 = vsel %vm1262_vm5, %v1249_v3, %v1252_v13  ;;  %v1267_v63 = vsel %vm1265_vm7, %v1255_v48, 2102212464 }
  0xe8   : > { %v2568_v36 = vmin.u32 %v987_v29, %v3854_v54  ;;  %v1271_v4 = vsel %vm1265_vm7, %v1258_v39, 920167782  ;;  %v1274_v12 = vsel %vm1262_vm5, %v1252_v13, %v1255_v48  ;;  %v1275_v21 = vsel %vm1265_vm7, %v1261_v19, 1326507024 }
  0xe9   : > { %v1268_v16 = vsel %vm1264_vm6, %v1252_v13, %v1267_v63  ;;  %v1272_v17 = vsel %vm1264_vm6, %v1255_v48, %v1271_v4  ;;  %v1276_v58 = vsel %vm1264_vm6, %v1258_v39, %v1275_v21  ;;  %vm1116_vm9 = vweird.f32 %v3595_v11 }
  0xea   : > { %v989_v20 = vclz %v2568_v36  ;;  %vm923_vm10 = vcmp.lt.s32.totalorder %v3693_v23, 0  ;;  %v1273_v15 = vsel %vm1263_vm8, %v1270_v55, %v1272_v17  ;;  %v1277_v28 = vsel %vm1263_vm8, %v1274_v12, %v1276_v58 }
  0xeb   : > { %v1269_v7 = vsel %vm1263_vm8, %v1266_v10, %v1268_v16  ;;  %v3870_v22 = vmul.u32.u64.low %v1278_v2, %v1277_v28  ;;  %v3871_v26 = vmul.u32.u64.high %v1278_v2, %v1277_v28, %v3870_v22  ;;  %v1130_v18 = vand.u32 2139095040, %v3859_v0 }
  0xec   : > { %v2569_v60 = vadd.s32 4294967294, %v989_v20  ;;  %v3873_v38 = vmul.u32.u64.low %v1278_v2, %v1273_v15  ;;  %v3874_v24 = vmul.u32.u64.high %v1278_v2, %v1273_v15, %v3873_v38  ;;  %v3879_v27 = vmul.f32 0.62831855, %v3863_v5 }
  0xed   : > { %vm1119_vm11 = vcmp.eq.s32.totalorder %v1117_v25, 0  ;;  %vm1122_vm12 = vcmp.eq.s32.totalorder %v1117_v25, 2  ;;  %v977_v14 = vadd.s32 %v3793_v34, %v3802_v37  ;;  %v1007_v30 = vsub.s32 4, %v3832_v31 }
  0xee   : > { %vm2570_vm13 = vcmp.lt.s32.totalorder %v2569_v60, 0  ;;  %v2926_v6 = vpop.eup %2925  ;;  %v1285_v61 = vmul.u32 %v1278_v2, %v1269_v7  ;;  %v1131_v33 = vshrl.u32 %v1130_v18, 23  ;;  %vm1118_vm14 = vcmp.lt.s32.totalorder %v1117_v25, 2 }
  0xef   : > { %v992_v35 = vsel %vm2570_vm13, 0, %v2569_v60  ;;  %v2928_v46 = vpop.eup %2927  ;;  %v1123_v42 = vxor.u32 2147483648, %v2926_v6  ;;  %vm1287_vm15 = vc.u32 %v3871_v26, %v3873_v38  ;;  %v1288_v34 = vadd.s32 1, %v3874_v24 }
  0xf0   : > { %v993_v44 = vsub.s32 32, %v992_v35  ;;  %v994_v8 = vshll.u32 %v3854_v54, %v992_v35  ;;  %v997_v50 = vsub.s32 4294967266, %v992_v35  ;;  %v1120_v3 = vxor.u32 2147483648, %v2928_v46 }
  0xf1   : > { %v1124_v37 = vsel %vm1122_vm12, %v1123_v42, %v2928_v46  ;;  %v2575_v13 = vadd.s32 4294967169, %v1131_v33  ;;  %v1008_v48 = vsel %vm923_vm10, %v1007_v30, %v3832_v31  ;;  %v1289_v54 = vsel %vm1287_vm15, %v1288_v34, %v3874_v24 }
  0xf2   : > { %v995_v41 = vshrl.u32 %v977_v14, %v993_v44  ;;  %v998_v52 = vadd.s32 127, %v997_v50  ;;  %v1121_v32 = vsel %vm1119_vm11, %v2926_v6, %v1120_v3  ;;  %v1127_v39 = vand.u32 2147483647, %v3859_v0 }
  0xf3   : > { %v1125_v29 = vsel %vm1118_vm14, %v1121_v32, %v1124_v37  ;;  %v1290_v36 = vadd.s32 %v1289_v54, %v1285_v61  ;;  %vm1990_vm0 = vcmp.lt.f32.partialorder %v3581_v40, 5.0  ;;  %vm3900_vm1 = vcmp.le.f32.partialorder %v921_v56, 0.7853982 }
  0xf4   : > { %v996_v19 = vor.u32 %v995_v41, %v994_v8  ;;  %v999_v2 = vshll.u32 %v998_v52, 23  ;;  %v1126_v10 = vsel %vm1116_vm9, nan, %v1125_v29  ;;  %v1137_v31 = vadd.s32 1, %v2575_v13 }
  0xf5   : > { %v1958_v55 = vadd.f32 1.0, %v1126_v10  ;;  %v1291_v12 = vadd.s32 536870912, %v1290_v36  ;;  %v1010_v21 = vsel %vm3900_vm1, 0, %v1008_v48  ;;  %v1134_v11 = vand.u32 8388607, %v1127_v39 }
  0xf6   : > { %v1000_v63 = vor.u32 4788187, %v999_v2  ;;  %v1003_v4 = vcvt.s32.f32 %v996_v19  ;;  %vm1138_vm2 = vcmp.gt.s32.totalorder %v1137_v31, 0  ;;  %v1439_v20 = vand.u32 2139095040, %v3879_v27 }
  0xf7   : > { %v1974_v16 = vmul.f32 0.5, %v1958_v55  ;;  %v3909_v56 = vshrl.u32 %v1291_v12, 30  ;;  %v1139_v58 = vsel %vm1138_vm2, %v1137_v31, 0  ;;  %v3913_v7 = vand.u32 3, %v1010_v21 }
  0xf8   : > { %v1001_v17 = vand.u32 2147483647, %v1000_v63  ;;  %v1141_v15 = vand.u32 31, %v1139_v58  ;;  %v1135_v24 = vor.u32 8388608, %v1134_v11  ;;  %v1436_v14 = vand.u32 2147483647, %v3879_v27 }
  0xf9   : > { %v2006_v28 = vsel %vm1990_vm0, %v1974_v16, 0.0  ;;  %v1293_v22 = vshll.u32 %v3909_v56, 30  ;;  %v1440_v6 = vshrl.u32 %v1439_v20, 23  ;;  %v1140_v3 = vshrl.u32 %v1139_v58, 5 }
  0xfa   : > { %v1004_v60 = vmul.f32 %v1003_v4, %v1001_v17  ;;  %2245 = vperm.xlu1 %2891, %v2006_v28   ;;  %v1142_v18 = vsub.s32 32, %v1141_v15  ;;  %v1144_v61 = vshll.u32 %v3030_v43, %v1141_v15  ;;  %v1147_v33 = vshll.u32 %v3031_v45, %v1141_v15 }
  0xfb   : > { %v3917_v30 = vsub.s32 %v1290_v36, %v1293_v22  ;;  %v1150_v42 = vshll.u32 %v3032_v47, %v1141_v15  ;;  %v1153_v44 = vshll.u32 %v3033_v49, %v1141_v15  ;;  %v1286_v41 = vadd.s32 %v3873_v38, %v3871_v26 }
  0xfc   : > { %v1005_v35 = vxor.u32 2147483648, %v1004_v60  ;;  %v1145_v40 = vshrl.u32 %v3031_v45, %v1142_v18  ;;  %v1148_v46 = vshrl.u32 %v3032_v47, %v1142_v18  ;;  %v1151_v34 = vshrl.u32 %v3033_v49, %v1142_v18 }
  0xfd   : > { %v1296_v50 = vsub.s32 0, %v3917_v30  ;;  %v1143_v52 = vshrl.u32 %v3030_v43, %v1142_v18  ;;  %v1154_v13 = vshrl.u32 %v3034_v51, %v1142_v18  ;;  %v2587_v2 = vadd.s32 4294967169, %v1440_v6 }
  0xfe   : > { %v1006_v8 = vsel %vm923_vm10, %v1005_v35, %v1004_v60  ;;  %v1146_v48 = vor.u32 %v1145_v40, %v1144_v61  ;;  %v1149_v54 = vor.u32 %v1148_v46, %v1147_v33  ;;  %v1152_v29 = vor.u32 %v1151_v34, %v1150_v42 }
  0xff   : > { %v1009_v37 = vsel %vm3900_vm1, %v3693_v23, %v1006_v8  ;;  %v2580_v32 = vmin.u32 %v1296_v50, %v3917_v30  ;;  %v1155_v19 = vor.u32 %v1154_v13, %v1153_v44  ;;  %v1156_v10 = vshll.u32 %v3034_v51, %v1141_v15 }
 0x100   : > { %2929 = vcosq.f32 %v1009_v37  ;;  %v1157_v25 = vshrl.u32 %v3035_v59, %v1142_v18  ;;  %vm1159_vm3 = vcmp.lt.s32.totalorder %v1140_v3, 1  ;;  %vm1160_vm4 = vcmp.lt.s32.totalorder %v1140_v3, 2 }
 0x101   : > { %2931 = vsinq.f32 %v1009_v37  ;;  %v1298_v36 = vclz %v2580_v32  ;;  %vm1161_vm5 = vcmp.lt.s32.totalorder %v1140_v3, 3  ;;  %vm1162_vm6 = vcmp.lt.s32.totalorder %v1140_v3, 4 }
 0x102   : > { %v1163_v26 = vsel %vm1159_vm3, %v1143_v52, %v1146_v48  ;;  %vm1015_vm7 = vcmp.lt.s32.totalorder %v3913_v7, 2  ;;  %v1158_v31 = vor.u32 %v1157_v25, %v1156_v10  ;;  %v1164_v55 = vsel %vm1162_vm6, %v1152_v29, 2102212464 }
 0x103   : > { %v2581_v38 = vadd.s32 4294967294, %v1298_v36  ;;  %v1167_v63 = vsel %vm1159_vm3, %v1146_v48, %v1149_v54  ;;  %vm1013_vm8 = vweird.f32 %v3693_v23  ;;  %v1165_v4 = vsel %vm1161_vm5, %v1149_v54, %v1164_v55 }
 0x104   : > { %v1168_v12 = vsel %vm1162_vm6, %v1155_v19, 920167782  ;;  %v1171_v21 = vsel %vm1159_vm3, %v1149_v54, %v1152_v29  ;;  %v1175_v11 = vshll.u32 %v1135_v24, 8  ;;  %v1172_v16 = vsel %vm1162_vm6, %v1158_v31, 1326507024 }
 0x105   : > { %vm2582_vm9 = vcmp.lt.s32.totalorder %v2581_v38, 0  ;;  %v1169_v20 = vsel %vm1161_vm5, %v1152_v29, %v1168_v12  ;;  %v1446_v17 = vadd.s32 1, %v2587_v2  ;;  %v1166_v15 = vsel %vm1160_vm4, %v1163_v26, %v1165_v4 }
 0x106   : > { %v1301_v58 = vsel %vm2582_vm9, 0, %v2581_v38  ;;  %v1170_v28 = vsel %vm1160_vm4, %v1167_v63, %v1169_v20  ;;  %v1173_v60 = vsel %vm1161_vm5, %v1155_v19, %v1172_v16  ;;  %vm1019_vm10 = vcmp.eq.s32.totalorder %v3913_v7, 2 }
 0x107   : > { %v1302_v22 = vsub.s32 32, %v1301_v58  ;;  %v1303_v18 = vshll.u32 %v3917_v30, %v1301_v58  ;;  %v1306_v6 = vsub.s32 4294967266, %v1301_v58  ;;  %v1174_v35 = vsel %vm1160_vm4, %v1171_v21, %v1173_v60 }
 0x108   : > { %v3948_v61 = vmul.u32.u64.low %v1175_v11, %v1174_v35  ;;  %v3949_v24 = vmul.u32.u64.high %v1175_v11, %v1174_v35, %v3948_v61  ;;  %v3951_v33 = vmul.u32.u64.low %v1175_v11, %v1170_v28  ;;  %v3952_v40 = vmul.u32.u64.high %v1175_v11, %v1170_v28, %v3951_v33 }
 0x109   : > { %vm1989_vm11 = vcmp.lt.f32.partialorder %v3681_v53, 5.0  ;;  %v1304_v42 = vshrl.u32 %v1286_v41, %v1302_v22  ;;  %v1307_v44 = vadd.s32 127, %v1306_v6  ;;  %vm1447_vm12 = vcmp.gt.s32.totalorder %v1446_v17, 0 }
 0x10a   : > { %v2930_v46 = vpop.eup %2929  ;;  %vm1016_vm13 = vcmp.eq.s32.totalorder %v3913_v7, 0  ;;  %v1443_v50 = vand.u32 8388607, %v1436_v14  ;;  %v1448_v3 = vsel %vm1447_vm12, %v1446_v17, 0  ;;  %v1182_v13 = vmul.u32 %v1175_v11, %v1166_v15 }
 0x10b   : > { %v2932_v8 = vpop.eup %2931  ;;  %v1020_v30 = vxor.u32 2147483648, %v2930_v46  ;;  %v1305_v37 = vor.u32 %v1304_v42, %v1303_v18  ;;  %v1308_v52 = vshll.u32 %v1307_v44, 23  ;;  %vm1232_vm14 = vcmp.lt.s32.totalorder %v3752_v1, 0 }
 0x10c   : > { %v1017_v34 = vxor.u32 2147483648, %v2932_v8  ;;  %vm1184_vm15 = vc.u32 %v3949_v24, %v3951_v33  ;;  %v1185_v41 = vadd.s32 1, %v3952_v40  ;;  %v1450_v19 = vand.u32 31, %v1448_v3 }
 0x10d   : > { %v1021_v32 = vsel %vm1019_vm10, %v1020_v30, %v2932_v8  ;;  %v1309_v54 = vor.u32 4788187, %v1308_v52  ;;  %v1312_v29 = vcvt.s32.f32 %v1305_v37  ;;  %vm3970_vm0 = vcmp.le.f32.partialorder %v1230_v9, 0.7853982  ;;  %v4009_v52 = vld [vmem:[%s3136_s15 + $0x50] sm:$0xff] }
 0x10e   : > { %v1018_v48 = vsel %vm1016_vm13, %v2930_v46, %v1017_v34  ;;  %v1186_v10 = vsel %vm1184_vm15, %v1185_v41, %v3952_v40  ;;  %v1444_v25 = vor.u32 8388608, %v1443_v50  ;;  %v1451_v55 = vsub.s32 32, %v1450_v19 }
 0x10f   : > { %v1022_v2 = vsel %vm1015_vm7, %v1018_v48, %v1021_v32  ;;  %v1310_v38 = vand.u32 2147483647, %v1309_v54  ;;  %v1187_v31 = vadd.s32 %v1186_v10, %v1182_v13  ;;  %v1316_v4 = vsub.s32 4, %v3909_v56 }
 0x110   : > { %v1023_v26 = vsel %vm1013_vm8, nan, %v1022_v2  ;;  %v1453_v7 = vshll.u32 %v3030_v43, %v1450_v19  ;;  %v1456_v12 = vshll.u32 %v3031_v45, %v1450_v19  ;;  %v1454_v11 = vshrl.u32 %v3031_v45, %v1451_v55 }
 0x111   : > { %v1957_v63 = vadd.f32 1.0, %v1023_v26  ;;  %v1313_v9 = vmul.f32 %v1312_v29, %v1310_v38  ;;  %v1188_v21 = vadd.s32 536870912, %v1187_v31  ;;  %v1459_v20 = vshll.u32 %v3032_v47, %v1450_v19 }
 0x112   : > { %v1457_v23 = vshrl.u32 %v3032_v47, %v1451_v55  ;;  %v1460_v17 = vshrl.u32 %v3033_v49, %v1451_v55  ;;  %v1462_v58 = vshll.u32 %v3033_v49, %v1450_v19  ;;  %v1449_v60 = vshrl.u32 %v1448_v3, 5 }
 0x113   : > { %v1973_v16 = vmul.f32 0.5, %v1957_v63  ;;  %v1314_v15 = vxor.u32 2147483648, %v1313_v9  ;;  %v3985_v28 = vshrl.u32 %v1188_v21, 30  ;;  %v1463_v22 = vshrl.u32 %v3034_v51, %v1451_v55 }
 0x114   : > { %v1317_v6 = vsel %vm1232_vm14, %v1316_v4, %v3909_v56  ;;  %v1465_v35 = vshll.u32 %v3034_v51, %v1450_v19  ;;  %v3994_v61 = vshll.u32 %v1444_v25, 8  ;;  %v1455_v42 = vor.u32 %v1454_v11, %v1453_v7 }
 0x115   : > { %v2005_v18 = vsel %vm1989_vm11, %v1973_v16, 0.0  ;;  %v1315_v40 = vsel %vm1232_vm14, %v1314_v15, %v1313_v9  ;;  %v1190_v46 = vshll.u32 %v3985_v28, 30  ;;  %v1458_v44 = vor.u32 %v1457_v23, %v1456_v12 }
 0x116   : > { %2240 = vperm.xlu0 %2890, %v2005_v18   ;;  %v1318_v53 = vsel %vm3970_vm0, %v3752_v1, %v1315_v40  ;;  %v1461_v8 = vor.u32 %v1460_v17, %v1459_v20  ;;  %v1464_v30 = vor.u32 %v1463_v22, %v1462_v58  ;;  %v1466_v56 = vshrl.u32 %v3035_v59, %v1451_v55 }
 0x117   : > { %2933 = vcosq.f32 %v1318_v53  ;;  %v4003_v50 = vsub.s32 %v1187_v31, %v1190_v46  ;;  %vm1468_vm1 = vcmp.lt.s32.totalorder %v1449_v60, 1  ;;  %vm1471_vm2 = vcmp.lt.s32.totalorder %v1449_v60, 4 }
 0x118   : > { %v1319_v3 = vsel %vm3970_vm0, 0, %v1317_v6  ;;  %2935 = vsinq.f32 %v1318_v53  ;;  %v1452_v34 = vshrl.u32 %v3030_v43, %v1451_v55  ;;  %v1467_v37 = vor.u32 %v1466_v56, %v1465_v35 }
 0x119   : > { %v1193_v13 = vsub.s32 0, %v4003_v50  ;;  %vm1469_vm3 = vcmp.lt.s32.totalorder %v1449_v60, 2  ;;  %vm1470_vm4 = vcmp.lt.s32.totalorder %v1449_v60, 3  ;;  %v1473_v32 = vsel %vm1471_vm2, %v1461_v8, 2102212464 }
 0x11a   : > { %v1476_v41 = vsel %vm1468_vm1, %v1455_v42, %v1458_v44  ;;  %v1477_v48 = vsel %vm1471_vm2, %v1464_v30, 920167782  ;;  %v1480_v54 = vsel %vm1468_vm1, %v1458_v44, %v1461_v8  ;;  %v1481_v29 = vsel %vm1471_vm2, %v1467_v37, 1326507024 }
 0x11b   : > { %v1323_v19 = vand.u32 3, %v1319_v3  ;;  %v2576_v2 = vmin.u32 %v1193_v13, %v4003_v50  ;;  %v4016_v36 = vmul.f32 0.62831855, %v4009_v52  ;;  %v1472_v10 = vsel %vm1468_vm1, %v1452_v34, %v1455_v42 }
 0x11c   : > { %v1474_v25 = vsel %vm1470_vm4, %v1458_v44, %v1473_v32  ;;  %v1478_v26 = vsel %vm1470_vm4, %v1461_v8, %v1477_v48  ;;  %v1482_v38 = vsel %vm1470_vm4, %v1464_v30, %v1481_v29  ;;  %vm1322_vm5 = vweird.f32 %v3752_v1  ;;  %v4062_v1 = vld [vmem:[%s3136_s15 + $0x68] sm:$0xff] }
 0x11d   : > { %v1195_v31 = vclz %v2576_v2  ;;  %v1479_v55 = vsel %vm1469_vm3, %v1476_v41, %v1478_v26  ;;  %v1483_v63 = vsel %vm1469_vm3, %v1480_v54, %v1482_v38  ;;  %v1475_v11 = vsel %vm1469_vm3, %v1472_v10, %v1474_v25 }
 0x11e   : > { %v4022_v4 = vmul.u32.u64.low %v3994_v61, %v1483_v63  ;;  %v4023_v7 = vmul.u32.u64.high %v3994_v61, %v1483_v63, %v4022_v4  ;;  %v4026_v12 = vmul.u32.u64.low %v3994_v61, %v1479_v55  ;;  %v4027_v9 = vmul.u32.u64.high %v3994_v61, %v1479_v55, %v4026_v12 }
 0x11f   : > { %v2577_v21 = vadd.s32 4294967294, %v1195_v31  ;;  %v1336_v20 = vand.u32 2139095040, %v4016_v36  ;;  %vm1324_vm6 = vcmp.lt.s32.totalorder %v1323_v19, 2  ;;  %vm1325_vm7 = vcmp.eq.s32.totalorder %v1323_v19, 0 }
 0x120   : > { %vm1328_vm8 = vcmp.eq.s32.totalorder %v1323_v19, 2  ;;  %vm1992_vm9 = vcmp.lt.f32.partialorder %v3739_v62, 5.0  ;;  %v1183_v23 = vadd.s32 %v3951_v33, %v3949_v24  ;;  %v1213_v17 = vsub.s32 4, %v3985_v28 }
 0x121   : > { %v2934_v16 = vpop.eup %2933  ;;  %vm2578_vm10 = vcmp.lt.s32.totalorder %v2577_v21, 0  ;;  %v1337_v58 = vshrl.u32 %v1336_v20, 23  ;;  %v1491_v18 = vmul.u32 %v3994_v61, %v1475_v11  ;;  %vm1493_vm11 = vc.u32 %v4023_v7, %v4026_v12 }
 0x122   : > { %v2936_v15 = vpop.eup %2935  ;;  %v1329_v60 = vxor.u32 2147483648, %v2934_v16  ;;  %v1198_v22 = vsel %vm2578_vm10, 0, %v2577_v21  ;;  %v1494_v24 = vadd.s32 1, %v4027_v9  ;;  %v1333_v33 = vand.u32 2147483647, %v4016_v36 }
 0x123   : > { %v1326_v6 = vxor.u32 2147483648, %v2936_v15  ;;  %v1199_v35 = vsub.s32 32, %v1198_v22  ;;  %v1200_v40 = vshll.u32 %v4003_v50, %v1198_v22  ;;  %v1203_v46 = vsub.s32 4294967266, %v1198_v22 }
 0x124   : > { %v1330_v42 = vsel %vm1328_vm8, %v1329_v60, %v2936_v15  ;;  %v2583_v44 = vadd.s32 4294967169, %v1337_v58  ;;  %vm1129_vm12 = vcmp.lt.s32.totalorder %v3859_v0, 0  ;;  %v1495_v50 = vsel %vm1493_vm11, %v1494_v24, %v4027_v9 }
 0x125   : > { %v1327_v53 = vsel %vm1325_vm7, %v2934_v16, %v1326_v6  ;;  %v1201_v61 = vshrl.u32 %v1183_v23, %v1199_v35  ;;  %v1204_v8 = vadd.s32 127, %v1203_v46  ;;  %v1214_v56 = vsel %vm1129_vm12, %v1213_v17, %v3985_v28 }
 0x126   : > { %v1331_v30 = vsel %vm1324_vm6, %v1327_v53, %v1330_v42  ;;  %v1343_v3 = vadd.s32 1, %v2583_v44  ;;  %v1496_v32 = vadd.s32 %v1495_v50, %v1491_v18  ;;  %vm4055_vm13 = vcmp.le.f32.partialorder %v1127_v39, 0.7853982 }
 0x127   : > { %v1332_v34 = vsel %vm1322_vm5, nan, %v1331_v30  ;;  %v1202_v37 = vor.u32 %v1201_v61, %v1200_v40  ;;  %v1205_v13 = vshll.u32 %v1204_v8, 23  ;;  %v1340_v54 = vand.u32 8388607, %v1333_v33 }
 0x128   : > { %v1960_v41 = vadd.f32 1.0, %v1332_v34  ;;  %vm1344_vm14 = vcmp.gt.s32.totalorder %v1343_v3, 0  ;;  %v1497_v19 = vadd.s32 536870912, %v1496_v32  ;;  %v1216_v25 = vsel %vm4055_vm13, 0, %v1214_v56 }
 0x129   : > { %v1206_v28 = vor.u32 4788187, %v1205_v13  ;;  %v1209_v29 = vcvt.s32.f32 %v1202_v37  ;;  %v1345_v2 = vsel %vm1344_vm14, %v1343_v3, 0  ;;  %v1341_v55 = vor.u32 8388608, %v1340_v54 }
 0x12a   : > { %v1976_v10 = vmul.f32 0.5, %v1960_v41  ;;  %v1347_v26 = vand.u32 31, %v1345_v2  ;;  %v4066_v39 = vshrl.u32 %v1497_v19, 30  ;;  %v4071_v4 = vmul.f32 0.62831855, %v4062_v1 }
 0x12b   : > { %v1207_v38 = vand.u32 2147483647, %v1206_v28  ;;  %v4073_v21 = vand.u32 3, %v1216_v25  ;;  %v1346_v16 = vshrl.u32 %v1345_v2, 5  ;;  %v4086_v35 = vshll.u32 %v1341_v55, 8 }
 0x12c   : > { %v2008_v31 = vsel %vm1992_vm9, %v1976_v10, 0.0  ;;  %v1348_v63 = vsub.s32 32, %v1347_v26  ;;  %v1499_v11 = vshll.u32 %v4066_v39, 30  ;;  %v1350_v20 = vshll.u32 %v3030_v43, %v1347_v26 }
 0x12d   : > { %2255 = vperm.xlu1 %2891, %v2008_v31   ;;  %v1210_v9 = vmul.f32 %v1209_v29, %v1207_v38  ;;  %v1353_v17 = vshll.u32 %v3031_v45, %v1347_v26  ;;  %v1356_v60 = vshll.u32 %v3032_v47, %v1347_v26  ;;  %v1359_v6 = vshll.u32 %v3033_v49, %v1347_v26 }
 0x12e   : > { %v1351_v23 = vshrl.u32 %v3031_v45, %v1348_v63  ;;  %v1354_v62 = vshrl.u32 %v3032_v47, %v1348_v63  ;;  %v4080_v15 = vsub.s32 %v1496_v32, %v1499_v11  ;;  %v1357_v22 = vshrl.u32 %v3033_v49, %v1348_v63 }
 0x12f   : > { %v1211_v58 = vxor.u32 2147483648, %v1210_v9  ;;  %v1349_v18 = vshrl.u32 %v3030_v43, %v1348_v63  ;;  %v1645_v40 = vand.u32 2139095040, %v4071_v4  ;;  %v1360_v44 = vshrl.u32 %v3034_v51, %v1348_v63 }
 0x130   : > { %v1502_v42 = vsub.s32 0, %v4080_v15  ;;  %v1352_v24 = vor.u32 %v1351_v23, %v1350_v20  ;;  %v1355_v61 = vor.u32 %v1354_v62, %v1353_v17  ;;  %v1362_v8 = vshll.u32 %v3034_v51, %v1347_v26 }
 0x131   : > { %v1212_v46 = vsel %vm1129_vm12, %v1211_v58, %v1210_v9  ;;  %v1363_v30 = vshrl.u32 %v3035_v59, %v1348_v63  ;;  %v1358_v50 = vor.u32 %v1357_v22, %v1356_v60  ;;  %vm1365_vm15 = vcmp.lt.s32.totalorder %v1346_v16, 1  ;;  %v4125_v22 = vld [vmem:[%s3136_s15 + $0x60] sm:$0xff] }
 0x132   : > { %v1215_v53 = vsel %vm4055_vm13, %v3859_v0, %v1212_v46  ;;  %v2588_v56 = vmin.u32 %v1502_v42, %v4080_v15  ;;  %v1361_v3 = vor.u32 %v1360_v44, %v1359_v6  ;;  %v1646_v37 = vshrl.u32 %v1645_v40, 23 }
 0x133   : > { %2937 = vcosq.f32 %v1215_v53  ;;  %v1364_v34 = vor.u32 %v1363_v30, %v1362_v8  ;;  %vm1366_vm0 = vcmp.lt.s32.totalorder %v1346_v16, 2  ;;  %vm1367_vm1 = vcmp.lt.s32.totalorder %v1346_v16, 3 }
 0x134   : > { %2939 = vsinq.f32 %v1215_v53  ;;  %v1504_v13 = vclz %v2588_v56  ;;  %vm1368_vm2 = vcmp.lt.s32.totalorder %v1346_v16, 4  ;;  %v1369_v32 = vsel %vm1365_vm15, %v1349_v18, %v1352_v24 }
 0x135   : > { %v1370_v41 = vsel %vm1368_vm2, %v1358_v50, 2102212464  ;;  %v1373_v48 = vsel %vm1365_vm15, %v1352_v24, %v1355_v61  ;;  %v1374_v54 = vsel %vm1368_vm2, %v1361_v3, 920167782  ;;  %v1377_v2 = vsel %vm1365_vm15, %v1355_v61, %v1358_v50 }
 0x136   : > { %v2589_v28 = vadd.s32 4294967294, %v1504_v13  ;;  %v1371_v29 = vsel %vm1367_vm1, %v1355_v61, %v1370_v41  ;;  %v1375_v19 = vsel %vm1367_vm1, %v1358_v50, %v1374_v54  ;;  %vm1219_vm3 = vweird.f32 %v3859_v0 }
 0x137   : > { %v1492_v10 = vadd.s32 %v4026_v12, %v4023_v7  ;;  %v1376_v25 = vsel %vm1366_vm0, %v1373_v48, %v1375_v19  ;;  %v1378_v26 = vsel %vm1368_vm2, %v1364_v34, 1326507024  ;;  %v2595_v38 = vadd.s32 4294967169, %v1646_v37 }
 0x138   : > { %vm2590_vm4 = vcmp.lt.s32.totalorder %v2589_v28, 0  ;;  %v1379_v31 = vsel %vm1367_vm1, %v1361_v3, %v1378_v26  ;;  %v4110_v55 = vmul.u32.u64.low %v4086_v35, %v1376_v25  ;;  %v4111_v63 = vmul.u32.u64.high %v4086_v35, %v1376_v25, %v4110_v55 }
 0x139   : > { %vm1221_vm5 = vcmp.lt.s32.totalorder %v4073_v21, 2  ;;  %v1507_v9 = vsel %vm2590_vm4, 0, %v2589_v28  ;;  %v1372_v11 = vsel %vm1366_vm0, %v1369_v32, %v1371_v29  ;;  %v1380_v7 = vsel %vm1366_vm0, %v1377_v2, %v1379_v31 }
 0x13a   : > { %v1508_v12 = vsub.s32 32, %v1507_v9  ;;  %v1509_v20 = vshll.u32 %v4080_v15, %v1507_v9  ;;  %v1512_v23 = vsub.s32 4294967266, %v1507_v9  ;;  %v1652_v17 = vadd.s32 1, %v2595_v38 }
 0x13b   : > { %vm1225_vm6 = vcmp.eq.s32.totalorder %v4073_v21, 2  ;;  %v4120_v62 = vmul.u32.u64.low %v4086_v35, %v1380_v7  ;;  %v4121_v58 = vmul.u32.u64.high %v4086_v35, %v1380_v7, %v4120_v62  ;;  %v1642_v60 = vand.u32 2147483647, %v4071_v4 }
 0x13c   : > { %vm1991_vm7 = vcmp.lt.f32.partialorder %v3849_v57, 5.0  ;;  %v1510_v16 = vshrl.u32 %v1492_v10, %v1508_v12  ;;  %v1513_v6 = vadd.s32 127, %v1512_v23  ;;  %v1391_v40 = vadd.s32 1, %v4111_v63 }
 0x13d   : > { %v2938_v18 = vpop.eup %2937  ;;  %vm1653_vm8 = vcmp.gt.s32.totalorder %v1652_v17, 0  ;;  %vm1222_vm9 = vcmp.eq.s32.totalorder %v4073_v21, 0  ;;  %vm1438_vm10 = vcmp.lt.s32.totalorder %v3879_v27, 0  ;;  %v1388_v42 = vmul.u32 %v4086_v35, %v1372_v11 }
 0x13e   : > { %v2940_v15 = vpop.eup %2939  ;;  %v1226_v46 = vxor.u32 2147483648, %v2938_v18  ;;  %v1654_v24 = vsel %vm1653_vm8, %v1652_v17, 0  ;;  %vm4134_vm11 = vcmp.le.f32.partialorder %v1436_v14, 0.7853982  ;;  %v1511_v61 = vor.u32 %v1510_v16, %v1509_v20 }
 0x13f   : > { %v1223_v44 = vxor.u32 2147483648, %v2940_v15  ;;  %v1514_v8 = vshll.u32 %v1513_v6, 23  ;;  %v4139_v30 = vmul.f32 0.62831855, %v4125_v22  ;;  %vm1390_vm12 = vc.u32 %v4121_v58, %v4110_v55 }
 0x140   : > { %v1227_v56 = vsel %vm1225_vm6, %v1226_v46, %v2940_v15  ;;  %v1649_v35 = vand.u32 8388607, %v1642_v60  ;;  %v1656_v50 = vand.u32 31, %v1654_v24  ;;  %v1518_v34 = vcvt.s32.f32 %v1511_v61 }
 0x141   : > { %v1224_v3 = vsel %vm1222_vm9, %v2938_v18, %v1223_v44  ;;  %v1515_v14 = vor.u32 4788187, %v1514_v8  ;;  %v1392_v37 = vsel %vm1390_vm12, %v1391_v40, %v4111_v63  ;;  %v1522_v32 = vsub.s32 4, %v4066_v39 }
 0x142   : > { %v1228_v13 = vsel %vm1221_vm5, %v1224_v3, %v1227_v56  ;;  %v1393_v41 = vadd.s32 %v1392_v37, %v1388_v42  ;;  %v1657_v48 = vsub.s32 32, %v1656_v50  ;;  %v1655_v29 = vshrl.u32 %v1654_v24, 5 }
 0x143   : > { %v1229_v54 = vsel %vm1219_vm3, nan, %v1228_v13  ;;  %v1516_v28 = vand.u32 2147483647, %v1515_v14  ;;  %v1659_v19 = vshll.u32 %v3030_v43, %v1656_v50  ;;  %v1662_v26 = vshll.u32 %v3031_v45, %v1656_v50 }
 0x144   : > { %v1959_v2 = vadd.f32 1.0, %v1229_v54  ;;  %v1394_v10 = vadd.s32 536870912, %v1393_v41  ;;  %v1660_v25 = vshrl.u32 %v3031_v45, %v1657_v48  ;;  %v1663_v21 = vshrl.u32 %v3032_v47, %v1657_v48 }
 0x145   : > { %v1519_v38 = vmul.f32 %v1518_v34, %v1516_v28  ;;  %v1665_v31 = vshll.u32 %v3032_v47, %v1656_v50  ;;  %v1668_v63 = vshll.u32 %v3033_v49, %v1656_v50  ;;  %v1666_v11 = vshrl.u32 %v3033_v49, %v1657_v48 }
 0x146   : > { %v1975_v9 = vmul.f32 0.5, %v1959_v2  ;;  %v1395_v0 = vshrl.u32 %v1394_v10, 30  ;;  %v1669_v7 = vshrl.u32 %v3034_v51, %v1657_v48  ;;  %v1523_v20 = vsel %vm1438_vm10, %v1522_v32, %v4066_v39 }
 0x147   : > { %v1520_v12 = vxor.u32 2147483648, %v1519_v38  ;;  %v1650_v23 = vor.u32 8388608, %v1649_v35  ;;  %v1671_v17 = vshll.u32 %v3034_v51, %v1656_v50  ;;  %v1658_v16 = vshrl.u32 %v3030_v43, %v1657_v48 }
 0x148   : > { %v2007_v62 = vsel %vm1991_vm7, %v1975_v9, 0.0  ;;  %v1396_v18 = vshll.u32 %v1395_v0, 30  ;;  %v1661_v6 = vor.u32 %v1660_v25, %v1659_v19  ;;  %v1664_v15 = vor.u32 %v1663_v21, %v1662_v26 }
 0x149   : > { %2250 = vperm.xlu0 %2890, %v2007_v62   ;;  %v1521_v40 = vsel %vm1438_vm10, %v1520_v12, %v1519_v38  ;;  %v1670_v46 = vor.u32 %v1669_v7, %v1668_v63  ;;  %v1672_v42 = vshrl.u32 %v3035_v59, %v1657_v48  ;;  %v1667_v57 = vor.u32 %v1666_v11, %v1665_v31 }
 0x14a   : > { %v1524_v39 = vsel %vm4134_vm11, %v3879_v27, %v1521_v40  ;;  %v4174_v24 = vsub.s32 %v1393_v41, %v1396_v18  ;;  %vm1674_vm13 = vcmp.lt.s32.totalorder %v1655_v29, 1  ;;  %v1525_v44 = vsel %vm4134_vm11, 0, %v1523_v20 }
 0x14b   : > { %2941 = vcosq.f32 %v1524_v39  ;;  %vm1335_vm14 = vcmp.lt.s32.totalorder %v4016_v36, 0  ;;  %v1673_v61 = vor.u32 %v1672_v42, %v1671_v17  ;;  %vm1677_vm15 = vcmp.lt.s32.totalorder %v1655_v29, 4 }
 0x14c   : > { %2943 = vsinq.f32 %v1524_v39  ;;  %v1399_v8 = vsub.s32 0, %v4174_v24  ;;  %vm1676_vm0 = vcmp.lt.s32.totalorder %v1655_v29, 3  ;;  %v1690_v56 = vshll.u32 %v1650_v23, 8 }
 0x14d   : > { %vm1675_vm1 = vcmp.lt.s32.totalorder %v1655_v29, 2  ;;  %v1679_v35 = vsel %vm1677_vm15, %v1667_v57, 2102212464  ;;  %v1682_v50 = vsel %vm1674_vm13, %v1661_v6, %v1664_v15  ;;  %v1683_v3 = vsel %vm1677_vm15, %v1670_v46, 920167782 }
 0x14e   : > { %v1529_v14 = vand.u32 3, %v1525_v44  ;;  %v2584_v34 = vmin.u32 %v1399_v8, %v4174_v24  ;;  %v1678_v53 = vsel %vm1674_vm13, %v1658_v16, %v1661_v6  ;;  %v1686_v37 = vsel %vm1674_vm13, %v1664_v15, %v1667_v57  ;;  %v4222_v8 = vld [vmem:[%s3136_s15 + $0x78] sm:$0xff] }
 0x14f   : > { %v1680_v13 = vsel %vm1676_vm0, %v1664_v15, %v1679_v35  ;;  %v1684_v32 = vsel %vm1676_vm0, %v1667_v57, %v1683_v3  ;;  %v1687_v41 = vsel %vm1677_vm15, %v1673_v61, 1326507024  ;;  %v1542_v48 = vand.u32 2139095040, %v4139_v30 }
 0x150   : > { %vm1528_vm2 = vweird.f32 %v3879_v27  ;;  %v1401_v54 = vclz %v2584_v34  ;;  %v1419_v28 = vsub.s32 4, %v1395_v0  ;;  %v1685_v19 = vsel %vm1675_vm1, %v1682_v50, %v1684_v32 }
 0x151   : > { %v1688_v2 = vsel %vm1676_vm0, %v1670_v46, %v1687_v41  ;;  %v1681_v10 = vsel %vm1675_vm1, %v1678_v53, %v1680_v13  ;;  %v4192_v26 = vmul.u32.u64.low %v1690_v56, %v1685_v19  ;;  %v4193_v38 = vmul.u32.u64.high %v1690_v56, %v1685_v19, %v4192_v26 }
 0x152   : > { %v1689_v25 = vsel %vm1675_vm1, %v1686_v37, %v1688_v2  ;;  %v2585_v21 = vadd.s32 4294967294, %v1401_v54  ;;  %v1543_v9 = vshrl.u32 %v1542_v48, 23  ;;  %vm1530_vm3 = vcmp.lt.s32.totalorder %v1529_v14, 2 }
 0x153   : > { %v4196_v31 = vmul.u32.u64.low %v1690_v56, %v1689_v25  ;;  %v4197_v63 = vmul.u32.u64.high %v1690_v56, %v1689_v25, %v4196_v31  ;;  %vm1531_vm4 = vcmp.eq.s32.totalorder %v1529_v14, 0  ;;  %vm1534_vm5 = vcmp.eq.s32.totalorder %v1529_v14, 2 }
 0x154   : > { %vm4201_vm6 = vcmp.le.f32.partialorder %v1333_v33, 0.7853982  ;;  %v1389_v29 = vadd.s32 %v4110_v55, %v4121_v58  ;;  %vm2586_vm7 = vcmp.lt.s32.totalorder %v2585_v21, 0  ;;  %v1420_v7 = vsel %vm1335_vm14, %v1419_v28, %v1395_v0 }
 0x155   : > { %v2591_v12 = vadd.s32 4294967169, %v1543_v9  ;;  %v2942_v20 = vpop.eup %2941  ;;  %v1404_v23 = vsel %vm2586_vm7, 0, %v2585_v21  ;;  %v1697_v17 = vmul.u32 %v1690_v56, %v1681_v10  ;;  %v1700_v62 = vadd.s32 1, %v4193_v38 }
 0x156   : > { %v1539_v18 = vand.u32 2147483647, %v4139_v30  ;;  %v2944_v16 = vpop.eup %2943  ;;  %v1535_v33 = vxor.u32 2147483648, %v2942_v20  ;;  %v1405_v6 = vsub.s32 32, %v1404_v23  ;;  %v1406_v40 = vshll.u32 %v4174_v24, %v1404_v23 }
 0x157   : > { %v1409_v15 = vsub.s32 4294967266, %v1404_v23  ;;  %v1532_v55 = vxor.u32 2147483648, %v2944_v16  ;;  %v1422_v58 = vsel %vm4201_vm6, 0, %v1420_v7  ;;  %vm1699_vm8 = vc.u32 %v4197_v63, %v4192_v26  ;;  %v4245_v23 = vpop.f32.mrb[0].mxu0 }
 0x158   : > { %v1549_v0 = vadd.s32 1, %v2591_v12  ;;  %v1536_v46 = vsel %vm1534_vm5, %v1535_v33, %v2944_v16  ;;  %v1407_v42 = vshrl.u32 %v1389_v29, %v1405_v6  ;;  %v1701_v57 = vsel %vm1699_vm8, %v1700_v62, %v4193_v38  ;;  %v4251_v6 = vpop.f32.mrb[1].mxu0 }
 0x159   : > { %v1410_v39 = vadd.s32 127, %v1409_v15  ;;  %v1533_v44 = vsel %vm1531_vm4, %v2942_v20, %v1532_v55  ;;  %v1702_v61 = vadd.s32 %v1701_v57, %v1697_v17  ;;  %v1546_v24 = vand.u32 8388607, %v1539_v18 }
 0x15a   : > { %vm1550_vm9 = vcmp.gt.s32.totalorder %v1549_v0, 0  ;;  %v1537_v56 = vsel %vm1530_vm3, %v1533_v44, %v1536_v46  ;;  %v1408_v35 = vor.u32 %v1407_v42, %v1406_v40  ;;  %vm1994_vm10 = vcmp.lt.f32.partialorder %v3863_v5, 5.0  ;;  %v4253_v40 = vpop.f32.mrb[0].mxu1 }
 0x15b   : > { %v1411_v50 = vshll.u32 %v1410_v39, 23  ;;  %v1551_v3 = vsel %vm1550_vm9, %v1549_v0, 0  ;;  %v1538_v34 = vsel %vm1528_vm2, nan, %v1537_v56  ;;  %v1703_v53 = vadd.s32 536870912, %v1702_v61  ;;  %v4260_v0 = vpop.f32.mrb[2].mxu0  ;;  %v4262_v46 = vpop.f32.mrb[1].mxu1 }
 0x15c   : > { %v1553_v37 = vand.u32 31, %v1551_v3  ;;  %v1962_v13 = vadd.f32 1.0, %v1538_v34  ;;  %v1415_v41 = vcvt.s32.f32 %v1408_v35  ;;  %v4229_v48 = vmul.f32 0.62831855, %v4222_v8 }
 0x15d   : > { %v1412_v32 = vor.u32 4788187, %v1411_v50  ;;  %v4231_v54 = vand.u32 3, %v1422_v58  ;;  %v4233_v14 = vshrl.u32 %v1703_v53, 30  ;;  %v1547_v28 = vor.u32 8388608, %v1546_v24 }
 0x15e   : > { %v1554_v19 = vsub.s32 32, %v1553_v37  ;;  %v1978_v2 = vmul.f32 0.5, %v1962_v13  ;;  %v1556_v27 = vshll.u32 %v3030_v43, %v1553_v37  ;;  %v1559_v25 = vshll.u32 %v3031_v45, %v1553_v37 }
 0x15f   : > { %v1413_v10 = vand.u32 2147483647, %v1412_v32  ;;  %v1705_v38 = vshll.u32 %v4233_v14, 30  ;;  %v1562_v31 = vshll.u32 %v3032_v47, %v1553_v37  ;;  %v1565_v9 = vshll.u32 %v3033_v49, %v1553_v37 }
 0x160   : > { %v1557_v21 = vshrl.u32 %v3031_v45, %v1554_v19  ;;  %v2010_v29 = vsel %vm1994_vm10, %v1978_v2, 0.0  ;;  %v1560_v12 = vshrl.u32 %v3032_v47, %v1554_v19  ;;  %v1563_v20 = vshrl.u32 %v3033_v49, %v1554_v19 }
 0x161   : > { %v1416_v7 = vmul.f32 %v1415_v41, %v1413_v10  ;;  %2265 = vperm.xlu1 %2891, %v2010_v29   ;;  %v4247_v17 = vsub.s32 %v1702_v61, %v1705_v38  ;;  %v1552_v62 = vshrl.u32 %v1551_v3, 5  ;;  %v1566_v16 = vshrl.u32 %v3034_v51, %v1554_v19  ;;  %v4266_v61 = vpop.f32.mrb[3].mxu0 }
 0x162   : > { %v1851_v33 = vand.u32 2139095040, %v4229_v48  ;;  %v1698_v15 = vadd.s32 %v4192_v26, %v4197_v63  ;;  %v1555_v55 = vshrl.u32 %v3030_v43, %v1554_v19  ;;  %v4258_v58 = vshll.u32 %v1547_v28, 8  ;;  %v4271_v35 = vpop.f32.mrb[4].mxu0 }
 0x163   : > { %v1417_v5 = vxor.u32 2147483648, %v1416_v7  ;;  %v1708_v42 = vsub.s32 0, %v4247_v17  ;;  %v1558_v39 = vor.u32 %v1557_v21, %v1556_v27  ;;  %v1561_v57 = vor.u32 %v1560_v12, %v1559_v25  ;;  %v4277_v53 = vpop.f32.mrb[5].mxu0 }
 0x164   : > { %v1568_v44 = vshll.u32 %v3034_v51, %v1553_v37  ;;  %v1564_v26 = vor.u32 %v1563_v20, %v1562_v31  ;;  %v1567_v63 = vor.u32 %v1566_v16, %v1565_v9  ;;  %v1569_v56 = vshrl.u32 %v3035_v59, %v1554_v19  ;;  %v4279_v37 = vpop.f32.mrb[2].mxu1  ;;  %v4281_v32 = vpop.f32.mrb[6].mxu0 }
 0x165   : > { %v1418_v24 = vsel %vm1335_vm14, %v1417_v5, %v1416_v7  ;;  %v2596_v3 = vmin.u32 %v1708_v42, %v4247_v17  ;;  %vm1571_vm11 = vcmp.lt.s32.totalorder %v1552_v62, 1  ;;  %v1852_v34 = vshrl.u32 %v1851_v33, 23  ;;  %v4283_v41 = vpop.f32.mrb[3].mxu1  ;;  %v4286_v19 = vpop.f32.mrb[7].mxu0 }
 0x166   : > { %v1421_v50 = vsel %vm4201_vm6, %v4016_v36, %v1418_v24  ;;  %v1570_v13 = vor.u32 %v1569_v56, %v1568_v44  ;;  %vm1572_vm12 = vcmp.lt.s32.totalorder %v1552_v62, 2  ;;  %vm1573_vm13 = vcmp.lt.s32.totalorder %v1552_v62, 3  ;;  %v4290_v38 = vpop.f32.mrb[4].mxu1 }
 0x167   : > { %2945 = vcosq.f32 %v1421_v50  ;;  %v1710_v28 = vclz %v2596_v3  ;;  %vm1574_vm14 = vcmp.lt.s32.totalorder %v1552_v62, 4  ;;  %v1575_v11 = vsel %vm1571_vm11, %v1555_v55, %v1558_v39 }
 0x168   : > { %2947 = vsinq.f32 %v1421_v50  ;;  %v1576_v2 = vsel %vm1574_vm14, %v1564_v26, 2102212464  ;;  %v1579_v10 = vsel %vm1571_vm11, %v1558_v39, %v1561_v57  ;;  %v1580_v27 = vsel %vm1574_vm14, %v1567_v63, 920167782 }
 0x169   : > { %v1583_v25 = vsel %vm1571_vm11, %v1561_v57, %v1564_v26  ;;  %v2597_v21 = vadd.s32 4294967294, %v1710_v28  ;;  %v1577_v31 = vsel %vm1573_vm13, %v1561_v57, %v1576_v2  ;;  %v1581_v9 = vsel %vm1573_vm13, %v1564_v26, %v1580_v27 }
 0x16a   : > { %v1584_v29 = vsel %vm1574_vm14, %v1570_v13, 1326507024  ;;  %v1578_v7 = vsel %vm1572_vm12, %v1575_v11, %v1577_v31  ;;  %v1582_v12 = vsel %vm1572_vm12, %v1579_v10, %v1581_v9  ;;  %v2603_v16 = vadd.s32 4294967169, %v1852_v34 }
 0x16b   : > { %v1585_v20 = vsel %vm1573_vm13, %v1567_v63, %v1584_v29  ;;  %vm2598_vm15 = vcmp.lt.s32.totalorder %v2597_v21, 0  ;;  %v4299_v5 = vmul.u32.u64.low %v4258_v58, %v1582_v12  ;;  %v4300_v55 = vmul.u32.u64.high %v4258_v58, %v1582_v12, %v4299_v5 }
 0x16c   : > { %v1586_v33 = vsel %vm1572_vm12, %v1583_v25, %v1585_v20  ;;  %v1713_v42 = vsel %vm2598_vm15, 0, %v2597_v21  ;;  %v1728_v39 = vsub.s32 4, %v4233_v14  ;;  %vm1425_vm0 = vweird.f32 %v4016_v36 }
 0x16d   : > { %v4305_v57 = vmul.u32.u64.low %v4258_v58, %v1586_v33  ;;  %v4306_v44 = vmul.u32.u64.high %v4258_v58, %v1586_v33, %v4305_v57  ;;  %v1714_v24 = vsub.s32 32, %v1713_v42  ;;  %v1715_v26 = vshll.u32 %v4247_v17, %v1713_v42 }
 0x16e   : > { %v1718_v63 = vsub.s32 4294967266, %v1713_v42  ;;  %vm1428_vm1 = vcmp.eq.s32.totalorder %v4231_v54, 0  ;;  %vm1644_vm2 = vcmp.lt.s32.totalorder %v4071_v4, 0  ;;  %v1594_v62 = vmul.u32 %v4258_v58, %v1578_v7 }
 0x16f   : > { %v1858_v56 = vadd.s32 1, %v2603_v16  ;;  %vm1431_vm3 = vcmp.eq.s32.totalorder %v4231_v54, 2  ;;  %v1716_v50 = vshrl.u32 %v1698_v15, %v1714_v24  ;;  %v1597_v34 = vadd.s32 1, %v4300_v55 }
 0x170   : > { %v1719_v3 = vadd.s32 127, %v1718_v63  ;;  %v1729_v28 = vsel %vm1644_vm2, %v1728_v39, %v4233_v14  ;;  %vm1596_vm4 = vc.u32 %v4306_v44, %v4299_v5  ;;  %v1848_v17 = vand.u32 2147483647, %v4229_v48 }
 0x171   : > { %v2946_v13 = vpop.eup %2945  ;;  %vm1859_vm5 = vcmp.gt.s32.totalorder %v1858_v56, 0  ;;  %v1717_v2 = vor.u32 %v1716_v50, %v1715_v26  ;;  %v1598_v15 = vsel %vm1596_vm4, %v1597_v34, %v4300_v55  ;;  %vm1427_vm6 = vcmp.lt.s32.totalorder %v4231_v54, 2 }
 0x172   : > { %v2948_v11 = vpop.eup %2947  ;;  %v1432_v58 = vxor.u32 2147483648, %v2946_v13  ;;  %v1720_v10 = vshll.u32 %v1719_v3, 23  ;;  %v1599_v25 = vadd.s32 %v1598_v15, %v1594_v62  ;;  %v1860_v21 = vsel %vm1859_vm5, %v1858_v56, 0 }
 0x173   : > { %v1429_v27 = vxor.u32 2147483648, %v2948_v11  ;;  %vm4327_vm7 = vcmp.le.f32.partialorder %v1642_v60, 0.7853982  ;;  %v1724_v29 = vcvt.s32.f32 %v1717_v2  ;;  %v1862_v16 = vand.u32 31, %v1860_v21 }
 0x174   : > { %v1433_v14 = vsel %vm1431_vm3, %v1432_v58, %v2948_v11  ;;  %v1721_v9 = vor.u32 4788187, %v1720_v10  ;;  %v1731_v12 = vsel %vm4327_vm7, 0, %v1729_v28  ;;  %v1600_v20 = vadd.s32 536870912, %v1599_v25 }
 0x175   : > { %v1430_v7 = vsel %vm1428_vm1, %v2946_v13, %v1429_v27  ;;  %vm1993_vm8 = vcmp.lt.f32.partialorder %v4009_v52, 5.0  ;;  %v1855_v60 = vand.u32 8388607, %v1848_v17  ;;  %v4342_v57 = vshrl.u32 %v1860_v21, 5 }
 0x176   : > { %v1434_v33 = vsel %vm1427_vm6, %v1430_v7, %v1433_v14  ;;  %v1722_v55 = vand.u32 2147483647, %v1721_v9  ;;  %v4340_v39 = vshrl.u32 %v1600_v20, 30  ;;  %v1863_v54 = vsub.s32 32, %v1862_v16  ;;  %v4363_v9 = vld [vmem:[%s3136_s15 + $0x70] sm:$0xff]  ;;  %s2969_s15 = sshll.u32 %s3036_s22, 4  ;;  %s2970_s15 = int_to_ptr.vmem [resolvable:$false] %s2969_s15 }
 0x177   : > { %v1435_v42 = vsel %vm1425_vm0, nan, %v1434_v33  ;;  %v4344_v63 = vand.u32 3, %v1731_v12  ;;  %v1865_v62 = vshll.u32 %v3030_v43, %v1862_v16  ;;  %v1868_v3 = vshll.u32 %v3031_v45, %v1862_v16  ;;  %s2971_s16 = scalar_lea.vmem %s2970_s15, 2048  ;;  %p2972_p0 = scmp.lt.s32.totalorder %s4647_s9, %s2970_s15 }
 0x178   : > { %v1961_v24 = vadd.f32 1.0, %v1435_v42  ;;  %v1725_v26 = vmul.f32 %v1724_v29, %v1722_v55  ;;  %v1602_v56 = vshll.u32 %v4340_v39, 30  ;;  %v1866_v50 = vshrl.u32 %v3031_v45, %v1863_v54  ;;  %p2973_p1 = scmp.lt.s32.totalorder %s2971_s16, %s2965_s14 }
 0x179   : > { %v1871_v36 = vshll.u32 %v3032_v47, %v1862_v16  ;;  %v1869_v28 = vshrl.u32 %v3032_v47, %v1863_v54  ;;  %v1872_v11 = vshrl.u32 %v3033_v49, %v1863_v54  ;;  %v1856_v2 = vor.u32 8388608, %v1855_v60 }
 0x17a   : > { %v1977_v34 = vmul.f32 0.5, %v1961_v24  ;;  %v1726_v13 = vxor.u32 2147483648, %v1725_v26  ;;  %v4353_v58 = vsub.s32 %v1599_v25, %v1602_v56  ;;  %v1864_v10 = vshrl.u32 %v3030_v43, %v1863_v54  ;;  %p2974_p2 = por %p2973_p1, %p2972_p0 }
 0x17b   : > { %vm1880_vm9 = vcmp.lt.s32.totalorder %v4342_v57, 1  ;;  %v1867_v21 = vor.u32 %v1866_v50, %v1865_v62  ;;  %v1874_v14 = vshll.u32 %v3033_v49, %v1862_v16  ;;  %v1870_v7 = vor.u32 %v1869_v28, %v1868_v3 }
 0x17c   : > { %v2009_v15 = vsel %vm1993_vm8, %v1977_v34, 0.0  ;;  %v1727_v27 = vsel %vm1644_vm2, %v1726_v13, %v1725_v26  ;;  %v1605_v29 = vsub.s32 0, %v4353_v58  ;;  %v1873_v12 = vor.u32 %v1872_v11, %v1871_v36  ;;  %v4390_v11 = vpop.f32.mrb[5].mxu1  ;;  %p2975_p3 = pnand %p2974_p2, %p2968_p13 }
 0x17d   : > { %2260 = vperm.xlu0 %2890, %v2009_v15   ;;  %v1730_v25 = vsel %vm4327_vm7, %v4071_v4, %v1727_v27  ;;  %v1875_v52 = vshrl.u32 %v3034_v51, %v1863_v54  ;;  %v1877_v20 = vshll.u32 %v3034_v51, %v1862_v16  ;;  %v1878_v33 = vshrl.u32 %v3035_v59, %v1863_v54 }
 0x17e   : > { %2949 = vcosq.f32 %v1730_v25  ;;  %vm1541_vm10 = vcmp.lt.s32.totalorder %v4139_v30, 0  ;;  %v2592_v55 = vmin.u32 %v1605_v29, %v4353_v58  ;;  %v4374_v60 = vshll.u32 %v1856_v2, 8 }
 0x17f   : > { %2951 = vsinq.f32 %v1730_v25  ;;  %v4377_v31 = vmul.f32 0.62831855, %v4363_v9  ;;  %v1876_v42 = vor.u32 %v1875_v52, %v1874_v14  ;;  %v1879_v24 = vor.u32 %v1878_v33, %v1877_v20 }
 0x180   : > { %vm1881_vm11 = vcmp.lt.s32.totalorder %v4342_v57, 2  ;;  %vm1882_vm12 = vcmp.lt.s32.totalorder %v4342_v57, 3  ;;  %v1607_v26 = vclz %v2592_v55  ;;  %vm1883_vm13 = vcmp.lt.s32.totalorder %v4342_v57, 4 }
 0x181   : > { %v1884_v16 = vsel %vm1880_vm9, %v1864_v10, %v1867_v21  ;;  %v1888_v54 = vsel %vm1880_vm9, %v1867_v21, %v1870_v7  ;;  %vm1736_vm14 = vcmp.lt.s32.totalorder %v4344_v63, 2  ;;  %v1885_v62 = vsel %vm1883_vm13, %v1873_v12, 2102212464  ;;  %v4399_v21 = vpop.f32.mrb[6].mxu1 }
 0x182   : > { %v1889_v56 = vsel %vm1883_vm13, %v1876_v42, 920167782  ;;  %v1892_v50 = vsel %vm1880_vm9, %v1870_v7, %v1873_v12  ;;  %v1893_v3 = vsel %vm1883_vm13, %v1879_v24, 1326507024  ;;  %vm1734_vm15 = vweird.f32 %v4071_v4 }
 0x183   : > { %v2593_v36 = vadd.s32 4294967294, %v1607_v26  ;;  %v1886_v34 = vsel %vm1882_vm12, %v1870_v7, %v1885_v62  ;;  %v1890_v13 = vsel %vm1882_vm12, %v1873_v12, %v1889_v56  ;;  %v1894_v28 = vsel %vm1882_vm12, %v1876_v42, %v1893_v3  ;;  %v4407_v7 = vpop.f32.mrb[7].mxu1 }
 0x184   : > { %v1595_v2 = vadd.s32 %v4299_v5, %v4306_v44  ;;  %v1625_v10 = vsub.s32 4, %v4340_v39  ;;  %v1891_v15 = vsel %vm1881_vm11, %v1888_v54, %v1890_v13  ;;  %v1895_v27 = vsel %vm1881_vm11, %v1892_v50, %v1894_v28 }
 0x185   : > { %vm2594_vm0 = vcmp.lt.s32.totalorder %v2593_v36, 0  ;;  %v1887_v14 = vsel %vm1881_vm11, %v1884_v16, %v1886_v34  ;;  %v4404_v25 = vmul.u32.u64.low %v4374_v60, %v1895_v27  ;;  %v4405_v29 = vmul.u32.u64.high %v4374_v60, %v1895_v27, %v4404_v25 }
 0x186   : > { %v1610_v5 = vsel %vm2594_vm0, 0, %v2593_v36  ;;  %v4410_v44 = vmul.u32.u64.low %v4374_v60, %v1891_v15  ;;  %v4411_v12 = vmul.u32.u64.high %v4374_v60, %v1891_v15, %v4410_v44  ;;  %v1748_v52 = vand.u32 2139095040, %v4377_v31 }
 0x187   : > { %vm1737_vm1 = vcmp.eq.s32.totalorder %v4344_v63, 0  ;;  %v1611_v20 = vsub.s32 32, %v1610_v5  ;;  %v1612_v33 = vshll.u32 %v4353_v58, %v1610_v5  ;;  %v1615_v57 = vsub.s32 4294967266, %v1610_v5  ;;  %v4440_v5 = vld [vmem:[%s4697_s4] ss:$0 sm:$0xff] }
 0x188   : > { %v2950_v55 = vpop.eup %2949  ;;  %vm1740_vm2 = vcmp.eq.s32.totalorder %v4344_v63, 2  ;;  %v1626_v42 = vsel %vm1541_vm10, %v1625_v10, %v4340_v39  ;;  %v1745_v24 = vand.u32 2147483647, %v4377_v31  ;;  %v1749_v26 = vshrl.u32 %v1748_v52, 23 }
 0x189   : > { %v2952_v16 = vpop.eup %2951  ;;  %v1741_v54 = vxor.u32 2147483648, %v2950_v55  ;;  %v1613_v62 = vshrl.u32 %v1595_v2, %v1611_v20  ;;  %v1616_v56 = vadd.s32 127, %v1615_v57  ;;  %v1903_v50 = vmul.u32 %v4374_v60, %v1887_v14 }
 0x18a   : > { %v1738_v3 = vxor.u32 2147483648, %v2952_v16  ;;  %vm1905_vm3 = vc.u32 %v4405_v29, %v4410_v44  ;;  %v1906_v58 = vadd.s32 1, %v4411_v12  ;;  %v2599_v36 = vadd.s32 4294967169, %v1749_v26 }
 0x18b   : > { %v1742_v34 = vsel %vm1740_vm2, %v1741_v54, %v2952_v16  ;;  %vm4426_vm4 = vcmp.le.f32.partialorder %v1539_v18, 0.7853982  ;;  %v1614_v13 = vor.u32 %v1613_v62, %v1612_v33  ;;  %v1617_v28 = vshll.u32 %v1616_v56, 23  ;;  %v2221_v56 = vpop.permute.xlu1 %2220 }
 0x18c   : > { %v1739_v2 = vsel %vm1737_vm1, %v2950_v55, %v1738_v3  ;;  %v1628_v60 = vsel %vm4426_vm4, 0, %v1626_v42  ;;  %v1907_v10 = vsel %vm1905_vm3, %v1906_v58, %v4411_v12  ;;  %v1755_v15 = vadd.s32 1, %v2599_v36  ;;  %v4466_v36 = vld [vmem:[%s4451_s26 + $0x8] sm:$0xff]  }
 0x18d   : > { %v1743_v27 = vsel %vm1736_vm14, %v1739_v2, %v1742_v34  ;;  %v1618_v14 = vor.u32 4788187, %v1617_v28  ;;  %v1621_v18 = vcvt.s32.f32 %v1614_v13  ;;  %v1908_v25 = vadd.s32 %v1907_v10, %v1903_v50 }
 0x18e   : > { %v1744_v52 = vsel %vm1734_vm15, nan, %v1743_v27  ;;  %v1752_v20 = vand.u32 8388607, %v1745_v24  ;;  %vm1756_vm5 = vcmp.gt.s32.totalorder %v1755_v15, 0  ;;  %vm1996_vm6 = vcmp.lt.f32.partialorder %v4062_v1, 5.0 }
 0x18f   : > { %v1964_v12 = vadd.f32 1.0, %v1744_v52  ;;  %v1619_v33 = vand.u32 2147483647, %v1618_v14  ;;  %v1909_v57 = vadd.s32 536870912, %v1908_v25  ;;  %v1757_v63 = vsel %vm1756_vm5, %v1755_v15, 0 }
 0x190   : > { %v4454_v55 = vand.u32 3, %v1628_v60  ;;  %v1759_v4 = vand.u32 31, %v1757_v63  ;;  %v2154_v42 = vadd.f32 %v4245_v23, %v4440_v5  ;;  %v4459_v54 = vadd.s32 %v4410_v44, %v4405_v29 }
 0x191   : > { %v1980_v26 = vmul.f32 0.5, %v1964_v12  ;;  %v1622_v16 = vmul.f32 %v1621_v18, %v1619_v33  ;;  %v4461_v62 = vshrl.u32 %v1909_v57, 30  ;;  %v1753_v50 = vor.u32 8388608, %v1752_v20 }
 0x192   : > { %v1760_v3 = vsub.s32 32, %v1759_v4  ;;  %v1762_v58 = vshll.u32 %v3030_v43, %v1759_v4  ;;  %v1765_v1 = vshll.u32 %v3031_v45, %v1759_v4  ;;  %v1768_v28 = vshll.u32 %v3032_v47, %v1759_v4 }
 0x193   : > { %v2012_v34 = vsel %vm1996_vm6, %v1980_v26, 0.0  ;;  %v1623_v13 = vxor.u32 2147483648, %v1622_v16  ;;  %v1911_v23 = vshll.u32 %v4461_v62, 30  ;;  %v2290_v60 = vmul.f32 %v2221_v56, %v2154_v42  ;;  %v4498_v56 = vld [vmem:[%s4451_s26] sm:$0xff]  }
 0x194   : > { %2275 = vperm.xlu1 %2891, %v2012_v34   ;;  %v1763_v29 = vshrl.u32 %v3031_v45, %v1760_v3  ;;  %v1766_v44 = vshrl.u32 %v3032_v47, %v1760_v3  ;;  %v1769_v2 = vshrl.u32 %v3033_v49, %v1760_v3  ;;  %v1758_v27 = vshrl.u32 %v1757_v63, 5 }
 0x195   : > { %v1624_v10 = vsel %vm1541_vm10, %v1623_v13, %v1622_v16  ;;  %v4475_v15 = vsub.s32 %v1908_v25, %v1911_v23  ;;  %v2669_v14 = vunpack.c.l.bf16 %v4466_v36  ;;  %v1761_v52 = vshrl.u32 %v3030_v43, %v1760_v3 }
 0x196   : > { %v1627_v18 = vsel %vm4426_vm4, %v4139_v30, %v1624_v10  ;;  %v1764_v45 = vor.u32 %v1763_v29, %v1762_v58  ;;  %v1771_v47 = vshll.u32 %v3033_v49, %v1759_v4  ;;  %v1767_v12 = vor.u32 %v1766_v44, %v1765_v1 }
 0x197   : > { %2953 = vcosq.f32 %v1627_v18  ;;  %v1914_v20 = vsub.s32 0, %v4475_v15  ;;  %v1770_v33 = vor.u32 %v1769_v2, %v1768_v28  ;;  %v1772_v25 = vshrl.u32 %v3034_v51, %v1760_v3 }
 0x198   : > { %2955 = vsinq.f32 %v1627_v18  ;;  %v1774_v57 = vshll.u32 %v3034_v51, %v1759_v4  ;;  %v1775_v63 = vshrl.u32 %v3035_v59, %v1760_v3  ;;  %vm1637_vm7 = vcmp.eq.s32.totalorder %v4454_v55, 2  ;;  %v2211_v51 = vpop.permute.xlu0 %2210 }
 0x199   : > { %v2604_v43 = vmin.u32 %v1914_v20, %v4475_v15  ;;  %v4489_v39 = vshll.u32 %v1753_v50, 8  ;;  %v4491_v49 = vmul.f32 %v2669_v14, %v2290_v60  ;;  %v2146_v42 = vadd.f32 %v4440_v5, %v4251_v6  ;;  %v2226_v60 = vpop.permute.xlu1 %2225 }
 0x19a   : > { %vm1634_vm8 = vcmp.eq.s32.totalorder %v4454_v55, 0  ;;  %v1773_v26 = vor.u32 %v1772_v25, %v1771_v47  ;;  %v1776_v16 = vor.u32 %v1775_v63, %v1774_v57  ;;  %vm1777_vm9 = vcmp.lt.s32.totalorder %v1758_v27, 1 }
 0x19b   : > { %vm1778_vm10 = vcmp.lt.s32.totalorder %v1758_v27, 2  ;;  %vm1633_vm11 = vcmp.lt.s32.totalorder %v4454_v55, 2  ;;  %v1916_v59 = vclz %v2604_v43  ;;  %vm1779_vm12 = vcmp.lt.s32.totalorder %v1758_v27, 3 }
 0x19c   : > { %vm1780_vm13 = vcmp.lt.s32.totalorder %v1758_v27, 4  ;;  %v1781_v4 = vsel %vm1777_vm9, %v1761_v52, %v1764_v45  ;;  %vm1631_vm14 = vweird.f32 %v4139_v30  ;;  %v1785_v3 = vsel %vm1777_vm9, %v1764_v45, %v1767_v12 }
 0x19d   : > { %v1782_v50 = vsel %vm1780_vm13, %v1770_v33, 2102212464  ;;  %v1786_v6 = vsel %vm1780_vm13, %v1773_v26, 920167782  ;;  %v1789_v58 = vsel %vm1777_vm9, %v1767_v12, %v1770_v33  ;;  %v2605_v1 = vadd.s32 4294967294, %v1916_v59 }
 0x19e   : > { %v1783_v34 = vsel %vm1779_vm12, %v1767_v12, %v1782_v50  ;;  %v1787_v13 = vsel %vm1779_vm12, %v1770_v33, %v1786_v6  ;;  %v1790_v23 = vsel %vm1780_vm13, %v1776_v16, 1326507024  ;;  %v2665_v2 = vunpack.c.l.bf16 %v4498_v56  ;;  %v2216_v12 = vpop.permute.xlu0 %2215 }
 0x19f   : > { %v1784_v28 = vsel %vm1778_vm10, %v1781_v4, %v1783_v34  ;;  %v1788_v29 = vsel %vm1778_vm10, %v1785_v3, %v1787_v13  ;;  %v1791_v44 = vsel %vm1779_vm12, %v1773_v26, %v1790_v23  ;;  %vm2606_vm15 = vcmp.lt.s32.totalorder %v2605_v1, 0 }
 0x1a0   : > { %v1792_v10 = vsel %vm1778_vm10, %v1789_v58, %v1791_v44  ;;  %v4506_v14 = vmul.u32.u64.low %v4489_v39, %v1788_v29  ;;  %v4507_v18 = vmul.u32.u64.high %v4489_v39, %v1788_v29, %v4506_v14  ;;  %v1919_v52 = vsel %vm2606_vm15, 0, %v2605_v1  ;;  %v2736_v29 = vld [vmem:[%s4451_s26 + $0x10] sm:$0xff]  }
 0x1a1   : > { %v4511_v45 = vmul.u32.u64.low %v4489_v39, %v1792_v10  ;;  %v4512_v47 = vmul.u32.u64.high %v4489_v39, %v1792_v10, %v4511_v45  ;;  %v2288_v20 = vmul.f32 %v2211_v51, %v2146_v42  ;;  %v2954_v33 = vpop.eup %2953  ;;  %vm1995_vm0 = vcmp.lt.f32.partialorder %v4125_v22, 5.0 }
 0x1a2   : > { %v1920_v25 = vsub.s32 32, %v1919_v52  ;;  %v1921_v57 = vshll.u32 %v4475_v15, %v1919_v52  ;;  %v1924_v27 = vsub.s32 4294967266, %v1919_v52  ;;  %v1800_v63 = vmul.u32 %v4489_v39, %v1784_v28  ;;  %v2956_v43 = vpop.eup %2955  ;;  %v2231_v28 = vpop.permute.xlu0 %2230 }
 0x1a3   : > { %v1638_v26 = vxor.u32 2147483648, %v2954_v33  ;;  %v2157_v16 = vadd.f32 %v4260_v0, %v4440_v5  ;;  %v2149_v42 = vadd.f32 %v4440_v5, %v4266_v61  ;;  %v2670_v51 = vunpack.c.h.bf16 %v4466_v36  ;;  %v2236_v36 = vpop.permute.xlu1 %2235 }
 0x1a4   : > { %v1635_v59 = vxor.u32 2147483648, %v2956_v43  ;;  %v1922_v4 = vshrl.u32 %v4459_v54, %v1920_v25  ;;  %v1925_v50 = vadd.s32 127, %v1924_v27  ;;  %v1803_v15 = vadd.s32 1, %v4507_v18 }
 0x1a5   : > { %v1639_v39 = vsel %vm1637_vm7, %v1638_v26, %v2956_v43  ;;  %vm1850_vm1 = vcmp.lt.s32.totalorder %v4229_v48, 0  ;;  %vm1802_vm2 = vc.u32 %v4512_v47, %v4506_v14  ;;  %v2336_v0 = vmul.f32 %v2665_v2, %v2288_v20  ;;  %v2737_v26 = vld [vmem:[%s4451_s26 + $0x18] sm:$0xff]  }
 0x1a6   : > { %v2291_v61 = vmul.f32 %v2226_v60, %v2157_v16  ;;  %v1636_v54 = vsel %vm1634_vm8, %v2954_v33, %v1635_v59  ;;  %v1923_v3 = vor.u32 %v1922_v4, %v1921_v57  ;;  %v1926_v6 = vshll.u32 %v1925_v50, 23  ;;  %v2241_v59 = vpop.permute.xlu0 %2240 }
 0x1a7   : > { %v1804_v58 = vsel %vm1802_vm2, %v1803_v15, %v4507_v18  ;;  %v1640_v1 = vsel %vm1633_vm11, %v1636_v54, %v1639_v39  ;;  %v2289_v23 = vmul.f32 %v2216_v12, %v2149_v42  ;;  %v2666_v10 = vunpack.c.h.bf16 %v4498_v56  ;;  %v2246_v56 = vpop.permute.xlu1 %2245  ;;  %v2738_v42 = vld [vmem:[%s4451_s26 + $0x20] sm:$0xff]  }
 0x1a8   : > { %v1805_v34 = vadd.s32 %v1804_v58, %v1800_v63  ;;  %v2339_v13 = vmul.f32 %v2670_v51, %v2291_v61  ;;  %v1641_v44 = vsel %vm1631_vm14, nan, %v1640_v1  ;;  %v1927_v2 = vor.u32 4788187, %v1926_v6 }
 0x1a9   : > { %v1930_v60 = vcvt.s32.f32 %v1923_v3  ;;  %v1963_v52 = vadd.f32 1.0, %v1641_v44  ;;  %v2170_v55 = vadd.f32 %v4271_v35, %v4440_v5  ;;  %v2337_v33 = vmul.f32 %v2666_v10, %v2289_v23 }
 0x1aa   : > { %v1806_v45 = vadd.s32 536870912, %v1805_v34  ;;  %v2703_v20 = vpack.c.bf16 %v2339_v13, %v4491_v49  ;;  %v1928_v18 = vand.u32 2147483647, %v1927_v2  ;;  %v2162_v12 = vadd.f32 %v4440_v5, %v4277_v53 }
 0x1ab   : > { %v2673_v25 = vunpack.c.l.bf16 %v2736_v29  ;;  %v1979_v30 = vmul.f32 0.5, %v1963_v52  ;;  %v2173_v49 = vadd.f32 %v4281_v32, %v4440_v5  ;;  %v2165_v35 = vadd.f32 %v4440_v5, %v4286_v19 }
 0x1ac   : > { %v4546_v57 = vshrl.u32 %v1806_v45, 30  ;;  %2742 = vst [vmem:[%s4548_s7 + $0x8] sm:$0xff] %v2703_v20   ;;  %v1931_v27 = vmul.f32 %v1930_v60, %v1928_v18  ;;  %v2698_v63 = vpack.c.bf16 %v2337_v33, %v2336_v0  ;;  %v2292_v43 = vmul.f32 %v2231_v28, %v2162_v12 }
 0x1ad   : > { %v2674_v53 = vunpack.c.h.bf16 %v2736_v29  ;;  %v2011_v16 = vsel %vm1995_vm0, %v1979_v30, 0.0  ;;  %vm4560_vm3 = vcmp.le.f32.partialorder %v1848_v17, 0.7853982  ;;  %v2293_v51 = vmul.f32 %v2236_v36, %v2165_v35 }
 0x1ae   : > { %v1808_v32 = vshll.u32 %v4546_v57, 30  ;;  %2270 = vperm.xlu0 %2890, %v2011_v16   ;;  %v1932_v19 = vxor.u32 2147483648, %v1931_v27  ;;  %v1934_v4 = vsub.s32 4, %v4461_v62  ;;  %2699 = vst [vmem:[%s4548_s7] sm:$0xff] %v2698_v63   ;;  %v4569_v50 = vadd.f32 %v4253_v40, %v4440_v5  ;;  %v2256_v16 = vpop.permute.xlu1 %2255 }
 0x1af   : > { %v2295_v22 = vmul.f32 %v2246_v56, %v2173_v49  ;;  %v2340_v17 = vmul.f32 %v2673_v25, %v2292_v43  ;;  %v2341_v39 = vmul.f32 %v2674_v53, %v2293_v51  ;;  %v2678_v0 = vunpack.c.h.bf16 %v2737_v26 }
 0x1b0   : > { %v1809_v15 = vsub.s32 %v1805_v34, %v1808_v32  ;;  %v1933_v61 = vsel %vm1850_vm1, %v1932_v19, %v1931_v27  ;;  %v2294_v36 = vmul.f32 %v2241_v59, %v2170_v55  ;;  %v2677_v54 = vunpack.c.l.bf16 %v2737_v26 }
 0x1b1   : > { %v1936_v3 = vsel %vm4560_vm3, %v4229_v48, %v1933_v61  ;;  %v2708_v58 = vpack.c.bf16 %v2341_v39, %v2340_v17  ;;  %v1935_v40 = vsel %vm1850_vm1, %v1934_v4, %v4461_v62  ;;  %v2343_v1 = vmul.f32 %v2678_v0, %v2295_v22 }
 0x1b2   : > { %v1811_v6 = vsub.s32 0, %v1809_v15  ;;  %2957 = vcosq.f32 %v1936_v3  ;;  %v2342_v34 = vmul.f32 %v2677_v54, %v2294_v36  ;;  %v4582_v28 = vadd.f32 %v4279_v37, %v4440_v5 }
 0x1b3   : > { %2959 = vsinq.f32 %v1936_v3  ;;  %2743 = vst [vmem:[%s4548_s7 + $0x10] sm:$0xff] %v2708_v58   ;;  %v1937_v29 = vsel %vm4560_vm3, 0, %v1935_v40  ;;  %v4588_v2 = vadd.f32 %v4290_v38, %v4440_v5  ;;  %v4593_v62 = vadd.f32 %v4440_v5, %v4390_v11 }
 0x1b4   : > { %v2600_v13 = vmin.u32 %v1811_v6, %v1809_v15  ;;  %v2713_v23 = vpack.c.bf16 %v2343_v1, %v2342_v34  ;;  %v4597_v10 = vadd.f32 %v4399_v21, %v4440_v5  ;;  %v4601_v37 = vadd.f32 %v4440_v5, %v4407_v7 }
 0x1b5   : > { %v1941_v52 = vand.u32 3, %v1937_v29  ;;  %v1801_v45 = vadd.s32 %v4506_v14, %v4512_v47  ;;  %vm1940_vm8 = vweird.f32 %v4229_v48  ;;  %v2181_v26 = vadd.f32 %v4440_v5, %v4283_v41 }
 0x1b6   : > { %v1813_v44 = vclz %v2600_v13  ;;  %2744 = vst [vmem:[%s4548_s7 + $0x18] sm:$0xff] %v2713_v23   ;;  %vm1998_vm9 = vcmp.lt.f32.partialorder %v4222_v8, 5.0  ;;  %vm4612_vm10 = vcmp.le.f32.partialorder %v1745_v24, 0.7853982  ;;  %vm1747_vm11 = vcmp.lt.s32.totalorder %v4377_v31, 0 }
 0x1b7   : > { %vm1946_vm5 = vcmp.eq.s32.totalorder %v1941_v52, 2  ;;  %vm1943_vm6 = vcmp.eq.s32.totalorder %v1941_v52, 0  ;;  %vm1942_vm7 = vcmp.lt.s32.totalorder %v1941_v52, 2  ;;  %v1831_v59 = vsub.s32 4, %v4546_v57 }
 0x1b8   : > { %v2601_v60 = vadd.s32 4294967294, %v1813_v44  ;;  %v2178_v19 = vadd.f32 %v4440_v5, %v4262_v46  ;;  %v2297_v8 = vmul.f32 %v2256_v16, %v2181_v26  ;;  %v2682_v22 = vunpack.c.h.bf16 %v2738_v42 }
 0x1b9   : > { %v2681_v17 = vunpack.c.l.bf16 %v2738_v42  ;;  %v1832_v0 = vsel %vm1747_vm11, %v1831_v59, %v4546_v57  ;;  %vm1837_vm15 = vweird.f32 %v4377_v31  ;;  %vm1997_vm0 = vcmp.lt.f32.partialorder %v4363_v9, 5.0 }
 0x1ba   : > { %vm2602_vm4 = vcmp.lt.s32.totalorder %v2601_v60, 0  ;;  %v2345_v61 = vmul.f32 %v2682_v22, %v2297_v8  ;;  %v1834_v5 = vsel %vm4612_vm10, 0, %v1832_v0 }
 0x1bb   : > { %v1816_v38 = vsel %vm2602_vm4, 0, %v2601_v60  ;;  %v1838_v3 = vand.u32 3, %v1834_v5 }
 0x1bc   : > { %v1817_v20 = vsub.s32 32, %v1816_v38  ;;  %v1818_v55 = vshll.u32 %v1809_v15, %v1816_v38  ;;  %v1821_v18 = vsub.s32 4294967266, %v1816_v38  ;;  %v2958_v11 = vpop.eup %2957 }
 0x1bd   : > { %v2960_v33 = vpop.eup %2959  ;;  %v1947_v12 = vxor.u32 2147483648, %v2958_v11  ;;  %vm1843_vm12 = vcmp.eq.s32.totalorder %v1838_v3, 2  ;;  %vm1840_vm13 = vcmp.eq.s32.totalorder %v1838_v3, 0  ;;  %vm1839_vm14 = vcmp.lt.s32.totalorder %v1838_v3, 2 }
 0x1be   : > { %v1819_v21 = vshrl.u32 %v1801_v45, %v1817_v20  ;;  %v1822_v25 = vadd.s32 127, %v1821_v18  ;;  %v1944_v7 = vxor.u32 2147483648, %v2960_v33  ;;  %v2739_v45 = vld [vmem:[%s4451_s26 + $0x28] sm:$0xff]  }
 0x1bf   : > { %v1948_v30 = vsel %vm1946_vm5, %v1947_v12, %v2960_v33  ;;  %v2686_v20 = vunpack.c.h.bf16 %v2739_v45 }
 0x1c0   : > { %v1820_v49 = vor.u32 %v1819_v21, %v1818_v55  ;;  %v1823_v14 = vshll.u32 %v1822_v25, 23  ;;  %v1945_v47 = vsel %vm1943_vm6, %v2958_v11, %v1944_v7  ;;  %v2685_v55 = vunpack.c.l.bf16 %v2739_v45  ;;  %v2740_v21 = vld [vmem:[%s4451_s26 + $0x30] sm:$0xff]  }
 0x1c1   : > { %v1949_v35 = vsel %vm1942_vm7, %v1945_v47, %v1948_v30  ;;  %v2690_v7 = vunpack.c.h.bf16 %v2740_v21  ;;  %v2689_v30 = vunpack.c.l.bf16 %v2740_v21 }
 0x1c2   : > { %v1824_v56 = vor.u32 4788187, %v1823_v14  ;;  %v1827_v27 = vcvt.s32.f32 %v1820_v49  ;;  %v1950_v63 = vsel %vm1940_vm8, nan, %v1949_v35 }
 0x1c3   : > { %v1966_v43 = vadd.f32 1.0, %v1950_v63 }
 0x1c4   : > { %v1825_v53 = vand.u32 2147483647, %v1824_v56  ;;  %v2741_v56 = vld [vmem:[%s4451_s26 + $0x38] sm:$0xff]  }
 0x1c5   : > { %v1982_v32 = vmul.f32 0.5, %v1966_v43  ;;  %v2694_v63 = vunpack.c.h.bf16 %v2741_v56 }
 0x1c6   : > { %v1828_v51 = vmul.f32 %v1827_v27, %v1825_v53 }
 0x1c7   : > { %v2014_v41 = vsel %vm1998_vm9, %v1982_v32, 0.0 }
 0x1c8   : > { %v1829_v4 = vxor.u32 2147483648, %v1828_v51  ;;  %2285 = vperm.xlu1 %2891, %v2014_v41   ;;  %v2251_v39 = vpop.permute.xlu0 %2250 }
 0x1c9   : > { %v2296_v36 = vmul.f32 %v2251_v39, %v2178_v19 }
 0x1ca   : > { %v1830_v15 = vsel %vm1747_vm11, %v1829_v4, %v1828_v51 }
 0x1cb   : > { %v1833_v24 = vsel %vm4612_vm10, %v4377_v31, %v1830_v15  ;;  %v2344_v46 = vmul.f32 %v2681_v17, %v2296_v36 }
 0x1cc   : > { %2961 = vcosq.f32 %v1833_v24 }
 0x1cd   : > { %2963 = vsinq.f32 %v1833_v24  ;;  %v2718_v54 = vpack.c.bf16 %v2345_v61, %v2344_v46 }
 0x1cf   : > { %2745 = vst [vmem:[%s4548_s7 + $0x20] sm:$0xff] %v2718_v54  }
 0x1d6   : > { %v2962_v6 = vpop.eup %2961 }
 0x1d7   : > { %v2964_v58 = vpop.eup %2963  ;;  %v1844_v40 = vxor.u32 2147483648, %v2962_v6 }
 0x1d8   : > { %v1841_v1 = vxor.u32 2147483648, %v2964_v58 }
 0x1d9   : > { %v1845_v57 = vsel %vm1843_vm12, %v1844_v40, %v2964_v58 }
 0x1da   : > { %v1842_v34 = vsel %vm1840_vm13, %v2962_v6, %v1841_v1 }
 0x1db   : > { %v1846_v13 = vsel %vm1839_vm14, %v1842_v34, %v1845_v57 }
 0x1dc   : > { %v1847_v23 = vsel %vm1837_vm15, nan, %v1846_v13 }
 0x1dd   : > { %v1965_v29 = vadd.f32 1.0, %v1847_v23 }
 0x1df   : > { %v1981_v44 = vmul.f32 0.5, %v1965_v29 }
 0x1e0   : > { %v2266_v52 = vpop.permute.xlu1 %2265 }
 0x1e1   : > { %v2013_v60 = vsel %vm1997_vm0, %v1981_v44, 0.0  ;;  %v2299_v38 = vmul.f32 %v2266_v52, %v4582_v28 }
 0x1e2   : > { %2280 = vperm.xlu0 %2890, %v2013_v60  }
 0x1e3   : > { %v2347_v31 = vmul.f32 %v2686_v20, %v2299_v38 }
 0x1fc   : > { %v2261_v18 = vpop.permute.xlu0 %2260 }
 0x1fd   : > { %v2298_v11 = vmul.f32 %v2261_v18, %v4569_v50 }
 0x1ff   : > { %v2346_v33 = vmul.f32 %v2685_v55, %v2298_v11 }
 0x201   : > { %v2723_v12 = vpack.c.bf16 %v2347_v31, %v2346_v33 }
 0x203   : > { %2746 = vst [vmem:[%s4548_s7 + $0x28] sm:$0xff] %v2723_v12  }
 0x213   : > { %v2276_v9 = vpop.permute.xlu1 %2275 }
 0x214   : > { %v2301_v25 = vmul.f32 %v2276_v9, %v4601_v37  ;;  %v2693_v37 = vunpack.c.l.bf16 %v2741_v56 }
 0x216   : > { %v2349_v49 = vmul.f32 %v2690_v7, %v2301_v25 }
 0x22d   : > { %v2271_v28 = vpop.permute.xlu0 %2270 }
 0x22e   : > { %v2300_v14 = vmul.f32 %v2271_v28, %v4593_v62 }
 0x230   : > { %v2348_v47 = vmul.f32 %v2689_v30, %v2300_v14 }
 0x232   : > { %v2728_v35 = vpack.c.bf16 %v2349_v49, %v2348_v47 }
 0x234   : > { %2747 = vst [vmem:[%s4548_s7 + $0x30] sm:$0xff] %v2728_v35  }
 0x247   : > { %v2286_v50 = vpop.permute.xlu1 %2285 }
 0x248   : > { %v2303_v27 = vmul.f32 %v2286_v50, %v4597_v10 }
 0x24a   : > { %v2351_v53 = vmul.f32 %v2694_v63, %v2303_v27 }
 0x261   : > { %v2281_v43 = vpop.permute.xlu0 %2280 }
 0x262   : > { %v2302_v26 = vmul.f32 %v2281_v43, %v4588_v2 }
 0x264   : > { %v2350_v16 = vmul.f32 %v2693_v37, %v2302_v26 }
 0x266   : > { %v2733_v62 = vpack.c.bf16 %v2351_v53, %v2350_v16 }
 0x268   : > { %2748 = vst [vmem:[%s4548_s7 + $0x38] sm:$0xff] %v2733_v62  }
 0x269   : > { %2978 = shalt.err (!%p2975_p3)
}
 0x26a   : > { %s2979_s17 = scalar_lea.hbm %s4645_s12, 1024  ;;  %s2983_s26 = scalar_lea.hbm %s4698_s5, 4096 }
 0x26b   : > { %p2980_p4 = scmp.ne.s32.totalorder %s4645_s12, %s2979_s17  ;;  %p2984_p9 = scmp.lt.u32.totalorder %s4645_s12, %s4698_s5 }
 0x26c   : > { %p2985_p10 = scmp.lt.u32.totalorder %s2983_s26, %s2979_s17  ;;  %p2987_p12 = scmp.lt.u32.totalorder %s2979_s17, %s4645_s12 }
 0x26d   : > { %p2981_p7 = pnand %p2980_p4, %p3107_p5 }
 0x26e   : > { %p2986_p11 = por %p2985_p10, %p2984_p9 }
 0x26f   : > { %p2982_p8 = pneg %p2981_p7 }
 0x270   : > { %p2988_p13 = por %p2987_p12, %p2986_p11 }
 0x272   : > { %p2989_p0 = pnand %p2988_p13, %p2982_p8 }
 0x274   : > { %2992 = shalt.err (!%p2989_p0)
}
 0x275   : > { %s3037_s7 = smov 64   ;;  %s3038_s8 = smov 4  }
 0x276   : > { %2842 = dma.vmem_to_hbm [thread:$0]  (%p3107_p5), %s4647_s9, 1024, %s4645_s12, %s4652_s13, %s3037_s7, %s3037_s7, %s3038_s8  }
 0x277 PF: > { %p2848_p1 = scmp.ge.s32.totalorder %s3027_s21, 2  ;;  %s2461_s10 = sand.u32 1, %s3015_s18  }
 0x278   : > { %s2462_s11 = scalar_lea.sflag [#allocation3], %s2461_s10 }
 0x279   : > { %p2845_p2 = pnand %p2848_p1, %p3111_p6 }
 0x27b   : > { %3010 = dma.done.wait (!%p2845_p2), %s2462_s11, 1024  }
 0x27c   : > { %3012 = vsyncadd (!%p2845_p2), %s2462_s11, 4294966272  ;;  %p15_p3 = scmp.ge.s32.totalorder %s3094_s24, 6   ;;  %s4733_s18 = smov %s3019_s19 }
 0x27d   : > { %s4734_s19 = smov %s3023_s20  ;;  %s4735_s20 = smov %s3105_s27 }
 0x27e   : > { %s4736_s21 = smov %s3094_s24  ;;  %17 = sbr.rel (!%p15_p3) target bundleno = 3 (0x3), region = 81 }
 0x285   :  { %2467 = vsyncpa [#allocation3], 1 }
 0x286   :  { %2469 = vsyncpa [#allocation3 + $0x1], 1 }

</bundles_post_ra>
